<compile_context>
chip_gen: v6e
topology: v6e:2x2x1
jax: 0.10.0
libtpu: 0.0.40
codegen_flags: <defaults>
</compile_context>

<pallas_src>
import math

import jax
import jax.numpy as jnp
from jax.experimental import pallas as pl
from jax.experimental.pallas import tpu as pltpu

d_k = d_v = 32
d_model = 128
n_heads = 4
LN_EPS = 1e-5          # torch.nn.LayerNorm default
MASK_FILL = -1.0e9     # masked_fill_ value in the reference


# ----------------------------------------------------------------------------
# Kernel
# ----------------------------------------------------------------------------
def _make_kernel(kv_fused, return_attn, use_bf16):
    mm_dtype = jnp.bfloat16 if use_bf16 else jnp.float32

    def kernel(*refs):
        idx = 0
        xq_ref = refs[idx]; idx += 1
        if kv_fused:
            xkv_ref = refs[idx]; idx += 1
            xk_ref = xv_ref = xkv_ref
        else:
            xk_ref = refs[idx]; xv_ref = refs[idx + 1]; idx += 2
        mask_ref, w_rq_ref, w_kv_ref, w_fc_ref = refs[idx:idx + 4]; idx += 4
        out_ref = refs[idx]; idx += 1
        attn_ref = refs[idx] if return_attn else None

        Bt, S, D = xq_ref.shape
        H, DK, DV = n_heads, d_k, d_v
        rows = Bt * S
        scale = 1.0 / math.sqrt(DK)

        # Flatten the batch tile into a row slab -> big-M matmuls on the MXU.
        xq = xq_ref[...].reshape(rows, D)

        # (1) Fused residual(fc0) | W_Q projection: one lane-dense 256-wide matmul.
        rq = jnp.dot(xq, w_rq_ref[...], preferred_element_type=jnp.float32)
        residual = rq[:, :D]                       # [rows, D] f32
        qall = rq[:, D:]                           # [rows, H*DK] f32

        # (2) K/V projections: single fused 256-wide matmul for self-attention
        #     (input_K is input_V); otherwise two 128-wide ones from the same
        #     fused weight (one weight DMA stream either way).
        if kv_fused:
            xkv = xk_ref[...].reshape(rows, D)
            kv = jnp.dot(xkv, w_kv_ref[...], preferred_element_type=jnp.float32)
            kall = kv[:, :H * DK]
            vall = kv[:, H * DK:]
        else:
            xk = xk_ref[...].reshape(rows, D)
            xv = xv_ref[...].reshape(rows, D)
            wkv = w_kv_ref[...]
            kall = jnp.dot(xk, wkv[:, :H * DK], preferred_element_type=jnp.float32)
            vall = jnp.dot(xv, wkv[:, H * DK:], preferred_element_type=jnp.float32)

        # (3) Heads -> leading batch axis once; only 3-D single-batch-dim einsums.
        def to_heads(y, d):
            return (y.reshape(Bt, S, H, d)
                     .transpose(0, 2, 1, 3)
                     .reshape(Bt * H, S, d))

        q = to_heads(qall, DK).astype(mm_dtype)    # [Bt*H, S, DK]
        k = to_heads(kall, DK).astype(mm_dtype)
        v = to_heads(vall, DV).astype(mm_dtype)

        scores = jnp.einsum("nqd,nkd->nqk", q, k,
                            preferred_element_type=jnp.float32) * scale
        scores = scores.reshape(Bt, H, S, S)

        # (4) Exact masked_fill(-1e9): correct even for fully-masked rows.
        masked = (mask_ref[...] != 0)[:, None, :, :]            # [Bt, 1, S, S]
        scores = jnp.where(masked, MASK_FILL, scores)

        # (5) Numerically stable softmax over keys, all heads at once.
        m = jnp.max(scores, axis=-1, keepdims=True)
        e = jnp.exp(scores - m)
        attn = e * pl.reciprocal(jnp.sum(e, axis=-1, keepdims=True), approx=False)

        if return_attn:
            # Single lane-dense store (last dim S*S instead of S).
            attn_ref[...] = attn.reshape(Bt, H, S * S)

        # (6) Context, heads back to lanes, output projection + residual + LN.
        ctx = jnp.einsum("nqk,nkd->nqd",
                         attn.reshape(Bt * H, S, S).astype(mm_dtype), v,
                         preferred_element_type=jnp.float32)    # [Bt*H, S, DV]
        context = (ctx.reshape(Bt, H, S, DV)
                      .transpose(0, 2, 1, 3)
                      .reshape(rows, H * DV)).astype(mm_dtype)
        output = jnp.dot(context, w_fc_ref[...],
                         preferred_element_type=jnp.float32)    # [rows, D]

        y = output + residual
        mean = jnp.mean(y, axis=-1, keepdims=True)
        var = jnp.mean((y - mean) ** 2, axis=-1, keepdims=True)
        out_ref[...] = ((y - mean) * jax.lax.rsqrt(var + LN_EPS)).reshape(Bt, S, D)

    return kernel


# ----------------------------------------------------------------------------
# Generation-aware sizing
# ----------------------------------------------------------------------------
def _tpu_info():
    """(physical VMEM bytes per core, multi-TensorCore chip?) with safe fallbacks."""
    vmem = 64 * 1024 * 1024          # conservative default (v7x per-core size)
    multi = True
    try:
        info = pltpu.get_tpu_info()
        v = int(getattr(info, "vmem_capacity_bytes"))
        if v > 0:
            vmem = v
        # v7x exposes 64 MiB per TC (2 TCs/chip); v5e/v6e expose 128 MiB (1 TC).
        multi = vmem < 100 * 1024 * 1024
        cores = getattr(info, "num_cores", None)
        if cores is not None:
            multi = int(cores) >= 2
    except Exception:
        pass
    return int(vmem), bool(multi)


def _vmem_block_cap(S, vmem_limit, in_bytes, return_attn):
    """Max batch elements per grid step that fit the VMEM budget (rough model)."""
    D, H = d_model, n_heads
    # Per batch element: pipelined input/output blocks (double-buffered) ...
    io = 3 * S * D * in_bytes + S * S * 1 + S * D * 4
    if return_attn:
        io += H * S * S * 4
    # ... plus in-kernel live values: projections/relayouts + softmax temps.
    live = 16 * S * D * 4 + 5 * H * S * S * 4
    per_b = 2 * io + live
    w_bytes = 2 * in_bytes * (D * (D + H * d_k) + D * 2 * H * d_k + H * d_v * D)
    budget = int(vmem_limit * 0.75) - w_bytes
    return max(1, budget // per_b)


def _pick_block_b(B, S, cap, multi_core, target_rows=512):
    """Batch-tile size: >= target_rows MXU rows per projection matmul when possible;
    on multi-TC chips keep >= 2 grid steps (both cores busy + pipelining); on
    single-TC chips prefer the fewest, biggest steps that fit VMEM."""
    want_bt = max(1, -(-target_rows // S))          # ceil(target_rows / S)
    if multi_core and B >= 2:
        bt = max(1, min(B // 2, cap, want_bt))
    else:
        bt = max(1, min(B, cap))
    while B % bt:
        bt -= 1
    return bt


# ----------------------------------------------------------------------------
# Wrapper
# ----------------------------------------------------------------------------
def multi_head_attention(input_Q, input_K, input_V, attn_mask, params, *,
                         block_b=None, return_attn=True, use_bf16=False):
    """input_Q/K/V: [B, S, d_model]; attn_mask: [B, S, S] bool (True == masked).
    params: PyTorch-style Linear weights [out_features, in_features].
    Returns (layer_norm_output [B, S, d_model] f32,
             attn [B, n_heads, S, S] f32 or None if return_attn=False)."""
    B, S, D = input_Q.shape
    assert D == d_model
    H = n_heads

    kv_fused = input_K is input_V
    in_dtype = jnp.bfloat16 if use_bf16 else jnp.float32
    in_bytes = 2 if use_bf16 else 4

    # int8 mask: 4x less HBM->VMEM traffic than f32; exact where() in kernel.
    mask_i8 = attn_mask.astype(jnp.int8)

    # Pre-transpose to [in, out]; fuse fc0|W_Q and W_K|W_V along the lane axis.
    w_rq = jnp.concatenate([params["fc0"].T, params["W_Q"].T], axis=1).astype(in_dtype)
    w_kv = jnp.concatenate([params["W_K"].T, params["W_V"].T], axis=1).astype(in_dtype)
    w_fc = params["fc"].T.astype(in_dtype)

    vmem_cap, multi_core = _tpu_info()
    vmem_limit = max(min(int(vmem_cap * 0.85), 96 * 1024 * 1024), 32 * 1024 * 1024)

    if block_b is None:
        cap = _vmem_block_cap(S, vmem_limit, in_bytes, return_attn)
        block_b = _pick_block_b(B, S, cap, multi_core)
    assert B % block_b == 0, (B, block_b)
    grid = (B // block_b,)

    blk_in = pl.BlockSpec((block_b, S, D), lambda b: (b, 0, 0))

    in_args, in_specs = [], []
    in_args.append(input_Q.astype(in_dtype)); in_specs.append(blk_in)
    if kv_fused:
        in_args.append(input_K.astype(in_dtype)); in_specs.append(blk_in)
    else:
        in_args.append(input_K.astype(in_dtype)); in_specs.append(blk_in)
        in_args.append(input_V.astype(in_dtype)); in_specs.append(blk_in)
    in_args.append(mask_i8)
    in_specs.append(pl.BlockSpec((block_b, S, S), lambda b: (b, 0, 0)))
    in_args.append(w_rq)
    in_specs.append(pl.BlockSpec((D, D + H * d_k), lambda b: (0, 0)))
    in_args.append(w_kv)
    in_specs.append(pl.BlockSpec((D, 2 * H * d_k), lambda b: (0, 0)))
    in_args.append(w_fc)
    in_specs.append(pl.BlockSpec((H * d_v, D), lambda b: (0, 0)))

    out_block = pl.BlockSpec((block_b, S, D), lambda b: (b, 0, 0))
    if return_attn:
        out_shape = (jax.ShapeDtypeStruct((B, S, D), jnp.float32),
                     jax.ShapeDtypeStruct((B, H, S * S), jnp.float32))
        out_specs = [out_block,
                     pl.BlockSpec((block_b, H, S * S), lambda b: (b, 0, 0))]
    else:
        out_shape = jax.ShapeDtypeStruct((B, S, D), jnp.float32)
        out_specs = out_block

    kernel = _make_kernel(kv_fused=kv_fused, return_attn=return_attn,
                          use_bf16=use_bf16)

    result = pl.pallas_call(
        kernel,
        out_shape=out_shape,
        grid_spec=pltpu.PrefetchScalarGridSpec(
            num_scalar_prefetch=0,
            grid=grid,
            in_specs=in_specs,
            out_specs=out_specs),
        compiler_params=pltpu.CompilerParams(
            dimension_semantics=("parallel",),
            vmem_limit_bytes=vmem_limit),
    )(*in_args)

    if return_attn:
        out, attn_flat = result
        return out, attn_flat.reshape(B, H, S, S)
    return result, None


# ----------------------------------------------------------------------------
# Pure-JAX reference mirroring the PyTorch forward (for validation)
# ----------------------------------------------------------------------------
def _reference(input_Q, input_K, input_V, attn_mask, params):
    B, S, D = input_Q.shape
    residual = input_Q @ params["fc0"].T

    def split_heads(x, w):
        y = x @ w.T                                        # [B, S, H*d]
        return y.reshape(B, S, n_heads, -1).transpose(0, 2, 1, 3)

    Q = split_heads(input_Q, params["W_Q"])
    K = split_heads(input_K, params["W_K"])
    V = split_heads(input_V, params["W_V"])
    scores = jnp.einsum("bhqd,bhkd->bhqk", Q, K) / math.sqrt(d_k)
    scores = jnp.where(attn_mask[:, None, :, :], MASK_FILL, scores)
    attn = jax.nn.softmax(scores, axis=-1)
    context = jnp.einsum("bhqk,bhkd->bhqd", attn, V)
    context = context.transpose(0, 2, 1, 3).reshape(B, S, n_heads * d_v)
    output = context @ params["fc"].T
    y = output + residual
    mean = jnp.mean(y, axis=-1, keepdims=True)
    var = jnp.mean((y - mean) ** 2, axis=-1, keepdims=True)
    return (y - mean) / jnp.sqrt(var + LN_EPS), attn


if __name__ == "__main__":
    key = jax.random.PRNGKey(0)
    B, S = 2, 8

    k_q, k_k, k_v, k0, k1, k2, k3, k4 = jax.random.split(key, 8)

    input_Q = jax.random.normal(k_q, (B, S, d_model), dtype=jnp.float32)
    input_K = jax.random.normal(k_k, (B, S, d_model), dtype=jnp.float32)
    input_V = jax.random.normal(k_v, (B, S, d_model), dtype=jnp.float32)

    # causal-style mask (True == masked); every row keeps >= 1 valid position
    idx = jnp.arange(S)
    attn_mask = jnp.broadcast_to(idx[None, :] > idx[:, None], (B, S, S))

    # deterministic weights, PyTorch Linear shape convention [out, in]
    bound = 1.0 / math.sqrt(d_model)
    params = {
        "fc0": jax.random.uniform(k0, (d_model, d_model), jnp.float32, -bound, bound),
        "W_Q": jax.random.uniform(k1, (d_k * n_heads, d_model), jnp.float32, -bound, bound),
        "W_K": jax.random.uniform(k2, (d_k * n_heads, d_model), jnp.float32, -bound, bound),
        "W_V": jax.random.uniform(k3, (d_v * n_heads, d_model), jnp.float32, -bound, bound),
        "fc":  jax.random.uniform(k4, (d_model, n_heads * d_v), jnp.float32, -bound, bound),
    }

    out_ref, attn_ref = _reference(input_Q, input_K, input_V, attn_mask, params)

    # 1) general path: distinct Q/K/V, f32, attention probabilities returned.
    out, attn = multi_head_attention(input_Q, input_K, input_V, attn_mask, params)
    jax.block_until_ready((out, attn))
    assert out.shape == (B, S, d_model) and attn.shape == (B, n_heads, S, S)
    assert jnp.allclose(out, out_ref, atol=1e-4, rtol=1e-4)
    assert jnp.allclose(attn, attn_ref, atol=1e-5, rtol=1e-5)

    # 2) self-attention path (K is V): fused K|V projection, attn output skipped.
    out_sa, attn_sa = multi_head_attention(input_Q, input_Q, input_Q, attn_mask,
                                           params, return_attn=False)
    out_sa = jax.block_until_ready(out_sa)
    out_sa_ref, _ = _reference(input_Q, input_Q, input_Q, attn_mask, params)
    assert attn_sa is None
    assert jnp.allclose(out_sa, out_sa_ref, atol=1e-4, rtol=1e-4)

    # 3) bf16 fast path (accuracy-gated): native MXU rate, f32 accumulation.
    out_bf, attn_bf = multi_head_attention(input_Q, input_K, input_V, attn_mask,
                                           params, use_bf16=True)
    jax.block_until_ready((out_bf, attn_bf))
    assert jnp.allclose(out_bf, out_ref, atol=3e-2, rtol=3e-2)
    assert jnp.allclose(attn_bf, attn_ref, atol=2e-2, rtol=2e-2)

    print("KERNEL_OK")
</pallas_src>

<mosaic_0001>
module attributes {stable_mosaic.version = 11 : i64} {
  func.func @kernel(%arg0: i32, %arg1: memref<1x8x128xf32, #tpu.memory_space<vmem>>, %arg2: memref<1x8x128xf32, #tpu.memory_space<vmem>>, %arg3: memref<1x8x128xf32, #tpu.memory_space<vmem>>, %arg4: memref<1x8x8xi8, #tpu.memory_space<vmem>>, %arg5: memref<128x256xf32, #tpu.memory_space<vmem>>, %arg6: memref<128x256xf32, #tpu.memory_space<vmem>>, %arg7: memref<128x128xf32, #tpu.memory_space<vmem>>, %arg8: memref<1x8x128xf32, #tpu.memory_space<vmem>>, %arg9: memref<1x4x64xf32, #tpu.memory_space<vmem>>) attributes {dimension_semantics = [#tpu.dimension_semantics<parallel>], iteration_bounds = array<i64: 2>, scalar_prefetch = 0 : i64, scratch_operands = 0 : i64, tpu.core_type = #tpu.core_type<tc>, window_params = [{transform_indices = @transform_0, window_bounds = array<i64: 1, 8, 128>}, {transform_indices = @transform_1, window_bounds = array<i64: 1, 8, 128>}, {transform_indices = @transform_2, window_bounds = array<i64: 1, 8, 128>}, {transform_indices = @transform_3, window_bounds = array<i64: 1, 8, 8>}, {pipeline_mode = #tpu.pipeline_mode<synchronous>, transform_indices = @transform_4, window_bounds = array<i64: 128, 256>}, {pipeline_mode = #tpu.pipeline_mode<synchronous>, transform_indices = @transform_5, window_bounds = array<i64: 128, 256>}, {pipeline_mode = #tpu.pipeline_mode<synchronous>, transform_indices = @transform_6, window_bounds = array<i64: 128, 128>}, {transform_indices = @transform_7, window_bounds = array<i64: 1, 8, 128>}, {transform_indices = @transform_8, window_bounds = array<i64: 1, 4, 64>}]} {
    %c0 = arith.constant 0 : index
    %c0_0 = arith.constant 0 : index
    %c0_1 = arith.constant 0 : index
    %0 = vector.load %arg1[%c0, %c0_0, %c0_1] : memref<1x8x128xf32, #tpu.memory_space<vmem>>, vector<1x8x128xf32>
    %1 = vector.shape_cast %0 : vector<1x8x128xf32> to vector<8x128xf32>
    %c0_2 = arith.constant 0 : index
    %c0_3 = arith.constant 0 : index
    %2 = vector.load %arg5[%c0_2, %c0_3] : memref<128x256xf32, #tpu.memory_space<vmem>>, vector<128x256xf32>
    %cst = arith.constant dense<0.000000e+00> : vector<8x256xf32>
    %3 = tpu.matmul %1, %2, %cst {dimension_numbers = #tpu.dot_dimension_numbers<[1], [0], [0], [1], [0, 0, 1, 1], [], []>} : vector<8x128xf32>, vector<128x256xf32>, vector<8x256xf32> -> vector<8x256xf32>
    %4 = vector.extract_strided_slice %3 {offsets = [0, 0], sizes = [8, 128], strides = [1, 1]} : vector<8x256xf32> to vector<8x128xf32>
    %5 = vector.extract_strided_slice %3 {offsets = [0, 128], sizes = [8, 128], strides = [1, 1]} : vector<8x256xf32> to vector<8x128xf32>
    %c0_4 = arith.constant 0 : index
    %c0_5 = arith.constant 0 : index
    %c0_6 = arith.constant 0 : index
    %6 = vector.load %arg2[%c0_4, %c0_5, %c0_6] : memref<1x8x128xf32, #tpu.memory_space<vmem>>, vector<1x8x128xf32>
    %7 = vector.shape_cast %6 : vector<1x8x128xf32> to vector<8x128xf32>
    %c0_7 = arith.constant 0 : index
    %c0_8 = arith.constant 0 : index
    %c0_9 = arith.constant 0 : index
    %8 = vector.load %arg3[%c0_7, %c0_8, %c0_9] : memref<1x8x128xf32, #tpu.memory_space<vmem>>, vector<1x8x128xf32>
    %9 = vector.shape_cast %8 : vector<1x8x128xf32> to vector<8x128xf32>
    %c0_10 = arith.constant 0 : index
    %c0_11 = arith.constant 0 : index
    %10 = vector.load %arg6[%c0_10, %c0_11] : memref<128x256xf32, #tpu.memory_space<vmem>>, vector<128x256xf32>
    %11 = vector.extract_strided_slice %10 {offsets = [0, 0], sizes = [128, 128], strides = [1, 1]} : vector<128x256xf32> to vector<128x128xf32>
    %cst_12 = arith.constant dense<0.000000e+00> : vector<8x128xf32>
    %12 = tpu.matmul %7, %11, %cst_12 {dimension_numbers = #tpu.dot_dimension_numbers<[1], [0], [0], [1], [0, 0, 1, 1], [], []>} : vector<8x128xf32>, vector<128x128xf32>, vector<8x128xf32> -> vector<8x128xf32>
    %13 = vector.extract_strided_slice %10 {offsets = [0, 128], sizes = [128, 128], strides = [1, 1]} : vector<128x256xf32> to vector<128x128xf32>
    %cst_13 = arith.constant dense<0.000000e+00> : vector<8x128xf32>
    %14 = tpu.matmul %9, %13, %cst_13 {dimension_numbers = #tpu.dot_dimension_numbers<[1], [0], [0], [1], [0, 0, 1, 1], [], []>} : vector<8x128xf32>, vector<128x128xf32>, vector<8x128xf32> -> vector<8x128xf32>
    %15 = vector.shape_cast %5 : vector<8x128xf32> to vector<1x8x4x32xf32>
    %16 = tpu.transpose %15, [0, 2, 1, 3] : vector<1x8x4x32xf32> -> vector<1x4x8x32xf32>
    %17 = vector.shape_cast %16 : vector<1x4x8x32xf32> to vector<4x8x32xf32>
    %18 = vector.shape_cast %12 : vector<8x128xf32> to vector<1x8x4x32xf32>
    %19 = tpu.transpose %18, [0, 2, 1, 3] : vector<1x8x4x32xf32> -> vector<1x4x8x32xf32>
    %20 = vector.shape_cast %19 : vector<1x4x8x32xf32> to vector<4x8x32xf32>
    %21 = vector.shape_cast %14 : vector<8x128xf32> to vector<1x8x4x32xf32>
    %22 = tpu.transpose %21, [0, 2, 1, 3] : vector<1x8x4x32xf32> -> vector<1x4x8x32xf32>
    %23 = vector.shape_cast %22 : vector<1x4x8x32xf32> to vector<4x8x32xf32>
    "tpu.trace_start"() <{level = 10 : i32, message = "nqd,nkd->nqk"}> : () -> ()
    %cst_14 = arith.constant dense<0.000000e+00> : vector<4x8x8xf32>
    %24 = tpu.matmul %17, %20, %cst_14 {dimension_numbers = #tpu.dot_dimension_numbers<[2], [2], [1], [1], [0, 0, 0, 1, 1, 1], [0], [0]>} : vector<4x8x32xf32>, vector<4x8x32xf32>, vector<4x8x8xf32> -> vector<4x8x8xf32>
    "tpu.trace_stop"() : () -> ()
    %cst_15 = arith.constant 0.176776692 : f32
    %25 = vector.broadcast %cst_15 : f32 to vector<4x8x8xf32>
    %26 = arith.mulf %24, %25 : vector<4x8x8xf32>
    %27 = vector.shape_cast %26 : vector<4x8x8xf32> to vector<1x4x8x8xf32>
    %c0_16 = arith.constant 0 : index
    %c0_17 = arith.constant 0 : index
    %c0_18 = arith.constant 0 : index
    %28 = vector.load %arg4[%c0_16, %c0_17, %c0_18] : memref<1x8x8xi8, #tpu.memory_space<vmem>>, vector<1x8x8xi8>
    %c0_i8 = arith.constant 0 : i8
    %29 = vector.broadcast %c0_i8 : i8 to vector<1x8x8xi8>
    %30 = arith.cmpi ne, %28, %29 : vector<1x8x8xi8>
    %31 = vector.shape_cast %30 : vector<1x8x8xi1> to vector<1x1x8x8xi1>
    %cst_19 = arith.constant -1.000000e+09 : f32
    %32 = vector.shape_cast %31 : vector<1x1x8x8xi1> to vector<1x1x8x8xi1>
    %33 = vector.broadcast %32 : vector<1x1x8x8xi1> to vector<1x4x8x8xi1>
    %34 = vector.broadcast %cst_19 : f32 to vector<1x4x8x8xf32>
    %35 = arith.select %33, %34, %27 : vector<1x4x8x8xi1>, vector<1x4x8x8xf32>
    %cst_20 = arith.constant dense<0xFF800000> : vector<1x4x8xf32>
    %36 = vector.multi_reduction <maximumf>, %35, %cst_20 [3] : vector<1x4x8x8xf32> to vector<1x4x8xf32>
    %37 = vector.shape_cast %36 : vector<1x4x8xf32> to vector<1x4x8x1xf32>
    %38 = vector.broadcast %37 : vector<1x4x8x1xf32> to vector<1x4x8x8xf32>
    %39 = arith.subf %35, %38 : vector<1x4x8x8xf32>
    %40 = math.exp %39 : vector<1x4x8x8xf32>
    %cst_21 = arith.constant dense<0.000000e+00> : vector<1x4x8xf32>
    %41 = vector.multi_reduction <add>, %40, %cst_21 [3] : vector<1x4x8x8xf32> to vector<1x4x8xf32>
    %42 = vector.shape_cast %41 : vector<1x4x8xf32> to vector<1x4x8x1xf32>
    %43 = tpu.reciprocal %42 : vector<1x4x8x1xf32> -> vector<1x4x8x1xf32>
    %44 = vector.broadcast %43 : vector<1x4x8x1xf32> to vector<1x4x8x8xf32>
    %45 = arith.mulf %40, %44 : vector<1x4x8x8xf32>
    %46 = vector.shape_cast %45 : vector<1x4x8x8xf32> to vector<1x4x64xf32>
    %c0_22 = arith.constant 0 : index
    %c0_23 = arith.constant 0 : index
    %c0_24 = arith.constant 0 : index
    %47 = vector.load %arg9[%c0_22, %c0_23, %c0_24] : memref<1x4x64xf32, #tpu.memory_space<vmem>>, vector<1x4x64xf32>
    tpu.vector_store %arg9[%c0_22, %c0_23, %c0_24], %46 {strides = array<i32>} : memref<1x4x64xf32, #tpu.memory_space<vmem>>, vector<1x4x64xf32>,
    %48 = vector.shape_cast %45 : vector<1x4x8x8xf32> to vector<4x8x8xf32>
    "tpu.trace_start"() <{level = 10 : i32, message = "nqk,nkd->nqd"}> : () -> ()
    %cst_25 = arith.constant dense<0.000000e+00> : vector<4x8x32xf32>
    %49 = tpu.matmul %48, %23, %cst_25 {dimension_numbers = #tpu.dot_dimension_numbers<[2], [1], [1], [2], [0, 0, 0, 1, 1, 2], [0], [0]>} : vector<4x8x8xf32>, vector<4x8x32xf32>, vector<4x8x32xf32> -> vector<4x8x32xf32>
    "tpu.trace_stop"() : () -> ()
    %50 = vector.shape_cast %49 : vector<4x8x32xf32> to vector<1x4x8x32xf32>
    %51 = tpu.transpose %50, [0, 2, 1, 3] : vector<1x4x8x32xf32> -> vector<1x8x4x32xf32>
    %52 = vector.shape_cast %51 : vector<1x8x4x32xf32> to vector<8x128xf32>
    %c0_26 = arith.constant 0 : index
    %c0_27 = arith.constant 0 : index
    %53 = vector.load %arg7[%c0_26, %c0_27] : memref<128x128xf32, #tpu.memory_space<vmem>>, vector<128x128xf32>
    %cst_28 = arith.constant dense<0.000000e+00> : vector<8x128xf32>
    %54 = tpu.matmul %52, %53, %cst_28 {dimension_numbers = #tpu.dot_dimension_numbers<[1], [0], [0], [1], [0, 0, 1, 1], [], []>} : vector<8x128xf32>, vector<128x128xf32>, vector<8x128xf32> -> vector<8x128xf32>
    %55 = arith.addf %54, %4 : vector<8x128xf32>
    %cst_29 = arith.constant dense<0.000000e+00> : vector<8xf32>
    %56 = vector.multi_reduction <add>, %55, %cst_29 [1] : vector<8x128xf32> to vector<8xf32>
    %57 = vector.shape_cast %56 : vector<8xf32> to vector<8x1xf32>
    %cst_30 = arith.constant 1.280000e+02 : f32
    %58 = vector.broadcast %cst_30 : f32 to vector<8x1xf32>
    %59 = arith.divf %57, %58 : vector<8x1xf32>
    %60 = vector.broadcast %59 : vector<8x1xf32> to vector<8x128xf32>
    %61 = arith.subf %55, %60 : vector<8x128xf32>
    %62 = arith.mulf %61, %61 : vector<8x128xf32>
    %cst_31 = arith.constant dense<0.000000e+00> : vector<8xf32>
    %63 = vector.multi_reduction <add>, %62, %cst_31 [1] : vector<8x128xf32> to vector<8xf32>
    %64 = vector.shape_cast %63 : vector<8xf32> to vector<8x1xf32>
    %cst_32 = arith.constant 1.280000e+02 : f32
    %65 = vector.broadcast %cst_32 : f32 to vector<8x1xf32>
    %66 = arith.divf %64, %65 : vector<8x1xf32>
    %67 = vector.broadcast %59 : vector<8x1xf32> to vector<8x128xf32>
    %68 = arith.subf %55, %67 : vector<8x128xf32>
    %cst_33 = arith.constant 9.99999974E-6 : f32
    %69 = vector.broadcast %cst_33 : f32 to vector<8x1xf32>
    %70 = arith.addf %66, %69 : vector<8x1xf32>
    %71 = math.rsqrt %70 : vector<8x1xf32>
    %72 = vector.broadcast %71 : vector<8x1xf32> to vector<8x128xf32>
    %73 = arith.mulf %68, %72 : vector<8x128xf32>
    %74 = vector.shape_cast %73 : vector<8x128xf32> to vector<1x8x128xf32>
    %c0_34 = arith.constant 0 : index
    %c0_35 = arith.constant 0 : index
    %c0_36 = arith.constant 0 : index
    %75 = vector.load %arg8[%c0_34, %c0_35, %c0_36] : memref<1x8x128xf32, #tpu.memory_space<vmem>>, vector<1x8x128xf32>
    tpu.vector_store %arg8[%c0_34, %c0_35, %c0_36], %74 {strides = array<i32>} : memref<1x8x128xf32, #tpu.memory_space<vmem>>, vector<1x8x128xf32>,
    return
  }
  func.func @transform_0(%arg0: i32) -> (i32, i32, i32) {
    %c0_i32 = arith.constant 0 : i32
    %c0_i32_0 = arith.constant 0 : i32
    %c0_i32_1 = arith.constant 0 : i32
    return %arg0, %c0_i32, %c0_i32_0 : i32, i32, i32
  }
  func.func @transform_1(%arg0: i32) -> (i32, i32, i32) {
    %c0_i32 = arith.constant 0 : i32
    %c0_i32_0 = arith.constant 0 : i32
    %c0_i32_1 = arith.constant 0 : i32
    return %arg0, %c0_i32, %c0_i32_0 : i32, i32, i32
  }
  func.func @transform_2(%arg0: i32) -> (i32, i32, i32) {
    %c0_i32 = arith.constant 0 : i32
    %c0_i32_0 = arith.constant 0 : i32
    %c0_i32_1 = arith.constant 0 : i32
    return %arg0, %c0_i32, %c0_i32_0 : i32, i32, i32
  }
  func.func @transform_3(%arg0: i32) -> (i32, i32, i32) {
    %c0_i32 = arith.constant 0 : i32
    %c0_i32_0 = arith.constant 0 : i32
    %c0_i32_1 = arith.constant 0 : i32
    return %arg0, %c0_i32, %c0_i32_0 : i32, i32, i32
  }
  func.func @transform_4(%arg0: i32) -> (i32, i32) {
    %c0_i32 = arith.constant 0 : i32
    %c0_i32_0 = arith.constant 0 : i32
    %c0_i32_1 = arith.constant 0 : i32
    return %c0_i32, %c0_i32_0 : i32, i32
  }
  func.func @transform_5(%arg0: i32) -> (i32, i32) {
    %c0_i32 = arith.constant 0 : i32
    %c0_i32_0 = arith.constant 0 : i32
    %c0_i32_1 = arith.constant 0 : i32
    return %c0_i32, %c0_i32_0 : i32, i32
  }
  func.func @transform_6(%arg0: i32) -> (i32, i32) {
    %c0_i32 = arith.constant 0 : i32
    %c0_i32_0 = arith.constant 0 : i32
    %c0_i32_1 = arith.constant 0 : i32
    return %c0_i32, %c0_i32_0 : i32, i32
  }
  func.func @transform_7(%arg0: i32) -> (i32, i32, i32) {
    %c0_i32 = arith.constant 0 : i32
    %c0_i32_0 = arith.constant 0 : i32
    %c0_i32_1 = arith.constant 0 : i32
    return %arg0, %c0_i32, %c0_i32_0 : i32, i32, i32
  }
  func.func @transform_8(%arg0: i32) -> (i32, i32, i32) {
    %c0_i32 = arith.constant 0 : i32
    %c0_i32_0 = arith.constant 0 : i32
    %c0_i32_1 = arith.constant 0 : i32
    return %arg0, %c0_i32, %c0_i32_0 : i32, i32, i32
  }
}

</mosaic_0001>

<bundles_post_ra>
// kernel: tpu_custom_call.1
= control target key start
LH: loop header
LB: loop body
LE: loop exit
PB: predicated region body
PF: predicated region fallthrough
CT: control target
= control target key end

     0   :  { %s3708_s0 = inlined_call_operand.hbm [shape: f32[2,8,128], index: 0, kind: input, shape index: {}]   ;;  %s3709_s1 = inlined_call_operand.hbm [shape: f32[2,8,128], index: 1, kind: input, shape index: {}]   ;;  %s3710_s2 = inlined_call_operand.hbm [shape: f32[2,8,128], index: 2, kind: input, shape index: {}]   ;;  %s3711_s3 = inlined_call_operand.vmem [shape: s8[2,8,8], index: 3, kind: input, shape index: {}]   ;;  %s3712_s4 = inlined_call_operand.hbm [shape: f32[128,256], index: 4, kind: input, shape index: {}]   ;;  %s3713_s5 = inlined_call_operand.hbm [shape: f32[128,256], index: 5, kind: input, shape index: {}]   ;;  %s3714_s6 = inlined_call_operand.hbm [shape: f32[128,128], index: 6, kind: input, shape index: {}]   ;;  %s3715_s7 = inlined_call_operand.hbm [shape: f32[2,8,128], index: 7, kind: output, shape index: {0}]   ;;  %s3716_s8 = inlined_call_operand.hbm [shape: f32[2,4,64], index: 8, kind: output, shape index: {1}]  }
   0x1   :  { %3733 = sst [smem:[#allocation27_spill]] %s3709_s1 }
   0x2   :  { %3734 = sst [smem:[#allocation28_spill]] %s3712_s4 }
   0x3   :  { %3735 = sst [smem:[#allocation29_spill]] %s3713_s5 }
   0x4   :  { %3736 = sst [smem:[#allocation30_spill]] %s3715_s7 }
   0x5   :  { %14 = vsyncpa [#allocation3], 0 }
   0x6   :  { %16 = vsyncpa [#allocation3 + $0x1], 0 }
   0x7   :  { %17 = vsyncpa [#allocation6], 0 }
   0x8   :  { %19 = vsyncpa [#allocation6 + $0x1], 0 }
   0x9   :  { %20 = vsyncpa [#allocation9], 0 }
   0xa   :  { %21 = vsyncpa [#allocation12], 0 }
   0xb   :  { %22 = vsyncpa [#allocation4], 0 }
   0xc   :  { %24 = vsyncpa [#allocation4 + $0x1], 0 }
   0xd   :  { %25 = vsyncpa [#allocation15], 0 }
   0xe   :  { %27 = vsyncpa [#allocation15 + $0x1], 0  ;;  %s3148_s27 = smov 0   ;;  %s3150_s28 = smov 0  }
   0xf   :  { %s3152_s29 = smov 0   ;;  %s3154_s30 = smov 0  }
  0x10 LB: > { %3737 = sst [smem:[#allocation22_spill]] %s3063_s27  ;;  %s3169_s9 = sadd.s32 4294967295, %s3075_s30   ;;  %s3075_s30 = sphi %s3154_s30, %s3773_s30   ;;  %s3071_s29 = sphi %s3152_s29, %s3777_s29   ;;  %s3067_s28 = sphi %s3150_s28, %s3776_s28   ;;  %s3063_s27 = sphi %s3148_s27, %s3775_s27  }
  0x11   : > { %3738 = sst [smem:[#allocation23_spill]] %s3075_s30  ;;  %s2419_s10 = sadd.s32 4294967294, %s3075_s30  }
  0x12   : > { %p53_p0 = scmp.ne.s32.totalorder %s3067_s28, %s3063_s27  ;;  %p3723_p1 = scmp.eq.s32.totalorder %s3169_s9, 0 }
  0x13   : > { %p218_p2 = scmp.eq.s32.totalorder %s3169_s9, 1  ;;  %p224_p3 = scmp.eq.s32.totalorder %s2419_s10, 1 }
  0x14   : > { %p3178_p4 = por %p3723_p1, %p53_p0  ;;  %p2420_p5 = scmp.ge.s32.totalorder %s3075_s30, 1 }
  0x15   : > { %p3183_p6 = por %p224_p3, %p53_p0  ;;  %p257_p7 = scmp.lt.s32.totalorder %s3075_s30, 3 }
  0x16   : > { %s3739_s11 = scalar_select %p3178_p4, 1, 0 }
  0x17   : > { %s3740_s12 = scalar_select %p3183_p6, 1, 0 }
  0x18   : > { %p3188_p8 = pnand %p2420_p5, %p257_p7  ;;  %s3077_s14 = smov [#allocation8]  }
  0x19   : > { %3741 = sst [smem:[#allocation24_spill]] %s3740_s12  ;;  %s269_s15 = sshll.u32 %s3077_s14, 4  ;;  %s270_s15 = int_to_ptr.vmem [resolvable:$true] %s269_s15 }
  0x1a   : > { %s3742_s13 = scalar_select %p3188_p8, 1, 0 }
  0x1b   : > { %p2701_p9 = pneg %p3188_p8  ;;  %s3202_s17 = sadd.s32 1, %s3075_s30  }
  0x1c   : > { %3744 = sst [smem:[#allocation25_spill]] %s3202_s17  ;;  %s40_s18 = sadd.s32 1, %s3071_s29 }
  0x1d   : > { %p3197_p11 = pnand %p2701_p9, %p3723_p1  ;;  %s37_s19 = ssub.s32 %s3075_s30, %s3202_s17 }
  0x1e   : > { %s2818_s20 = scalar_lea.vmem %s270_s15, 4096  ;;  %p2826_p5 = scmp.lt.s32.totalorder %s270_s15, %s270_s15 }
  0x1f   : > { %s3743_s16 = scalar_select %p3197_p11, 1, 0 }
  0x20   : > { %p3724_p12 = pneg %p3197_p11  ;;  %p2819_p13 = scmp.ne.s32.totalorder %s270_s15, %s2818_s20 }
  0x21   : > { %p2827_p7 = scmp.lt.s32.totalorder %s2818_s20, %s2818_s20 }
  0x22   : > { %p2821_p0 = pnand %p2819_p13, %p3724_p12 }
  0x23   : > { %p2828_p9 = por %p2827_p7, %p2826_p5 }
  0x24   : > { %p2822_p3 = pneg %p2821_p0 }
  0x26   : > { %p2829_p10 = pnand %p2828_p9, %p2822_p3 }
  0x28   : > { %2832 = shalt.err (!%p2829_p10)
}
  0x29   : > { %s3717_s21 = smov 256   ;;  %s3718_s22 = smov 16  }
  0x2a   : > { %s3745_s4 = sld [smem:[#allocation28_spill]]  ;;  %p38_p10 = scmp.eq.s32.totalorder %s37_s19, 0 }
  0x2b   : > { %p47_p13 = scmp.ne.s32.totalorder %s3071_s29, %s3067_s28  ;;  %p48_p0 = scmp.eq.s32.totalorder %s3075_s30, 0 }
  0x2c   : > { %p2731_p3 = scmp.lt.s32.totalorder %s3075_s30, 2  ;;  %s3719_s10 = sand.u32 1, %s3071_s29  }
  0x2d   : > { %s3225_s25 = scalar_select %p38_p10, %s3071_s29, %s40_s18  }
  0x2e   : > { %p49_p5 = por %p48_p0, %p47_p13  ;;  %p3229_p7 = por %p218_p2, %p47_p13 }
  0x2f   : > { %3746 = sst [smem:[#allocation26_spill]] %s3225_s25  ;;  %s3235_s14 = sshll.u32 %s3075_s30, 7 }
  0x30   : > { %2704 = dma.hbm_to_vmem [thread:$0]  (!%p3197_p11), %s3745_s4, 4096, %s270_s15, [#allocation9], %s3717_s21, %s3717_s21, %s3718_s22  }
  0x31   : > { %s3747_s26 = scalar_select %p3229_p7, 1, 0 }
  0x32   : > { %s3239_s20 = sshll.u32 %s3719_s10, 3  ;;  %p3241_p9 = pnand %p2731_p3, %p49_p5 }
  0x33   : > { %s327_s18 = sand.u32 1, %s3075_s30   ;;  %s3749_s1 = sld [smem:[#allocation27_spill]] }
  0x34   : > { %s331_s21 = scalar_lea.vmem [#allocation5], %s3239_s20  ;;  %s3253_s10 = scalar_lea.sflag [#allocation6], %s327_s18 }
  0x35   : > { %s338_s22 = sshll.u32 %s331_s21, 4  ;;  %p3259_p10 = pneg %p3241_p9  ;;  %s339_s22 = int_to_ptr.vmem [resolvable:$true] %s338_s22 }
  0x39   : > { %s3250_s24 = scalar_lea.hbm %s3749_s1, %s3235_s14  ;;  %s2838_s17 = scalar_lea.hbm %s3749_s1, 256 }
  0x3a   : > { %s2833_s4 = scalar_lea.hbm %s3250_s24, 128  ;;  %p2839_p3 = scmp.lt.s32.totalorder %s3250_s24, %s3749_s1 }
  0x3b   : > { %p2834_p2 = scmp.ne.s32.totalorder %s3250_s24, %s2833_s4  ;;  %p2840_p5 = scmp.lt.s32.totalorder %s2838_s17, %s2833_s4 }
  0x3d   : > { %p2836_p13 = pnand %p3259_p10, %p2834_p2  ;;  %p2841_p1 = por %p2840_p5, %p2839_p3 }
  0x3f   : > { %p2837_p0 = pneg %p2836_p13 }
  0x41   : > { %p2842_p12 = pnand %p2841_p1, %p2837_p0 }
  0x43   : > { %2845 = shalt.err (!%p2842_p12)
}
  0x44   : > { %s2846_s18 = scalar_lea.vmem %s339_s22, 128  ;;  %s3080_s12 = smov [#allocation5]  }
  0x45   : > { %p2847_p6 = scmp.ne.s32.totalorder %s339_s22, %s2846_s18  ;;  %s2851_s27 = sshll.u32 %s3080_s12, 4  ;;  %s2852_s27 = int_to_ptr.vmem [resolvable:$false] %s2851_s27 }
  0x46   : > { %s2853_s7 = scalar_lea.vmem %s2852_s27, 256  ;;  %p2854_p2 = scmp.lt.s32.totalorder %s339_s22, %s2852_s27 }
  0x47   : > { %p2849_p7 = pnand %p2847_p6, %p3259_p10  ;;  %p2855_p13 = scmp.lt.s32.totalorder %s2853_s7, %s2846_s18 }
  0x49   : > { %p2850_p4 = pneg %p2849_p7  ;;  %p2856_p8 = por %p2855_p13, %p2854_p2 }
  0x4b   : > { %p2857_p11 = pnand %p2856_p8, %p2850_p4 }
  0x4d   : > { %2860 = shalt.err (!%p2857_p11)
}
  0x4e   : > { %2717 = dma.hbm_to_vmem [thread:$0]  (!%p3241_p9), %s3250_s24, 128, %s339_s22, %s3253_s10  }
  0x4f   : > { %s3081_s4 = smov [#allocation10]   ;;  %s3082_s17 = smov [#allocation11]  }
  0x50   : > { %s282_s30 = sshll.u32 %s3081_s4, 4  ;;  %s295_s19 = sshll.u32 %s3082_s17, 4  ;;  %s283_s30 = int_to_ptr.vmem [resolvable:$true] %s282_s30  ;;  %s296_s19 = int_to_ptr.vmem [resolvable:$true] %s295_s19 }
  0x51   : > { %s2872_s23 = scalar_lea.vmem %s283_s30, 4096  ;;  %p3751_p6 = scmp.ne.s32.totalorder %s3743_s16, 0 }
  0x52   : > { %p2873_p1 = scmp.ne.s32.totalorder %s283_s30, %s2872_s23  ;;  %p2880_p3 = scmp.lt.s32.totalorder %s283_s30, %s283_s30 }
  0x53   : > { %p3752_p12 = pneg %p3751_p6  ;;  %p2881_p4 = scmp.lt.s32.totalorder %s2872_s23, %s2872_s23 }
  0x55   : > { %p2875_p7 = pnand %p2873_p1, %p3752_p12  ;;  %p2882_p8 = por %p2881_p4, %p2880_p3 }
  0x57   : > { %p2876_p0 = pneg %p2875_p7 }
  0x59   : > { %p2883_p11 = pnand %p2882_p8, %p2876_p0 }
  0x5b   : > { %2886 = shalt.err (!%p2883_p11)
}
  0x5c   : > { %s3753_s7 = smov 16   ;;  %s3754_s27 = smov 256  }
  0x5d   : > { %s3755_s5 = sld [smem:[#allocation29_spill]]  ;;  %s2898_s24 = scalar_lea.vmem %s296_s19, 2048 }
  0x5e   : > { %p2899_p5 = scmp.ne.s32.totalorder %s296_s19, %s2898_s24  ;;  %p3756_p2 = pmov %p3752_p12 }
  0x5f   : > { %p2906_p12 = scmp.lt.s32.totalorder %s296_s19, %s296_s19  ;;  %p2907_p7 = scmp.lt.s32.totalorder %s2898_s24, %s2898_s24 }
  0x60   : > { %p2901_p13 = pnand %p2899_p5, %p3756_p2 }
  0x61   : > { %p2908_p0 = por %p2907_p7, %p2906_p12 }
  0x62   : > { %p2902_p1 = pneg %p2901_p13 }
  0x63   : > { %2707 = dma.hbm_to_vmem [thread:$0]  (!%p3751_p6), %s3755_s5, 4096, %s283_s30, [#allocation9], %s3754_s27, %s3754_s27, %s3753_s7  }
  0x64   : > { %p2909_p3 = pnand %p2908_p0, %p2902_p1 }
  0x66   : > { %2912 = shalt.err (!%p2909_p3)
}
  0x67   : > { %s3083_s21 = smov 128   ;;  %s3084_s18 = smov 8  }
  0x68   : > { %2710 = dma.hbm_to_vmem [thread:$0]  (!%p3751_p6), %s3714_s6, 2048, %s296_s19, [#allocation12], %s3083_s21, %s3083_s21, %s3084_s18  }
  0x69   : > { %s3301_s7 = scalar_lea.hbm %s3708_s0, %s3235_s14  ;;  %s313_s27 = scalar_lea.vmem [#allocation2], %s3239_s20 }
  0x6a   : > { %s320_s12 = sshll.u32 %s313_s27, 4  ;;  %s3308_s1 = scalar_lea.hbm %s3710_s2, %s3235_s14  ;;  %s321_s12 = int_to_ptr.vmem [resolvable:$true] %s320_s12 }
  0x6b   : > { %s3757_s16 = sand.u32 1, %s3071_s29   ;;  %s2913_s4 = scalar_lea.hbm %s3301_s7, 128 }
  0x6c   : > { %s310_s5 = scalar_lea.sflag [#allocation3], %s3757_s16  ;;  %p2914_p6 = scmp.ne.s32.totalorder %s3301_s7, %s2913_s4 }
  0x6d   : > { %s2918_s18 = scalar_lea.hbm %s3708_s0, 256  ;;  %p2919_p11 = scmp.lt.s32.totalorder %s3301_s7, %s3708_s0 }
  0x6e   : > { %p2916_p4 = pnand %p2914_p6, %p3259_p10  ;;  %p2920_p5 = scmp.lt.s32.totalorder %s2918_s18, %s2913_s4 }
  0x70   : > { %p2917_p8 = pneg %p2916_p4  ;;  %p2921_p2 = por %p2920_p5, %p2919_p11 }
  0x72   : > { %p2922_p13 = pnand %p2921_p2, %p2917_p8 }
  0x74   : > { %2925 = shalt.err (!%p2922_p13)
}
  0x75   : > { %s2926_s14 = scalar_lea.vmem %s321_s12, 128  ;;  %s3085_s23 = smov [#allocation2]  }
  0x76   : > { %p2927_p1 = scmp.ne.s32.totalorder %s321_s12, %s2926_s14  ;;  %s2931_s27 = sshll.u32 %s3085_s23, 4  ;;  %s2932_s27 = int_to_ptr.vmem [resolvable:$false] %s2931_s27 }
  0x77   : > { %s2933_s22 = scalar_lea.vmem %s2932_s27, 256  ;;  %p2934_p0 = scmp.lt.s32.totalorder %s321_s12, %s2932_s27 }
  0x78   : > { %p2929_p12 = pnand %p2927_p1, %p3259_p10  ;;  %p2935_p3 = scmp.lt.s32.totalorder %s2933_s22, %s2926_s14 }
  0x7a   : > { %p2930_p7 = pneg %p2929_p12  ;;  %p2936_p6 = por %p2935_p3, %p2934_p0 }
  0x7c   : > { %p2937_p4 = pnand %p2936_p6, %p2930_p7 }
  0x7e   : > { %2940 = shalt.err (!%p2937_p4)
}
  0x7f   : > { %2714 = dma.hbm_to_vmem [thread:$0]  (!%p3241_p9), %s3301_s7, 128, %s321_s12, %s310_s5  }
  0x80   : > { %s349_s24 = scalar_lea.vmem [#allocation7], %s3239_s20  ;;  %s2941_s4 = scalar_lea.hbm %s3308_s1, 128 }
  0x81   : > { %s356_s16 = sshll.u32 %s349_s24, 4  ;;  %p2942_p8 = scmp.ne.s32.totalorder %s3308_s1, %s2941_s4  ;;  %s357_s16 = int_to_ptr.vmem [resolvable:$true] %s356_s16 }
  0x82   : > { %s2946_s18 = scalar_lea.hbm %s3710_s2, 256  ;;  %p2947_p2 = scmp.lt.s32.totalorder %s3308_s1, %s3710_s2 }
  0x83   : > { %p2944_p11 = pnand %p2942_p8, %p3259_p10  ;;  %p2948_p13 = scmp.lt.s32.totalorder %s2946_s18, %s2941_s4 }
  0x85   : > { %p2945_p5 = pneg %p2944_p11  ;;  %p2949_p1 = por %p2948_p13, %p2947_p2 }
  0x87   : > { %p2950_p12 = pnand %p2949_p1, %p2945_p5 }
  0x89   : > { %2953 = shalt.err (!%p2950_p12)
}
  0x8a   : > { %s2954_s5 = scalar_lea.vmem %s357_s16, 128  ;;  %s3086_s20 = smov [#allocation7]  }
  0x8b   : > { %p2955_p7 = scmp.ne.s32.totalorder %s357_s16, %s2954_s5  ;;  %s2959_s7 = sshll.u32 %s3086_s20, 4  ;;  %s2960_s7 = int_to_ptr.vmem [resolvable:$false] %s2959_s7 }
  0x8c   : > { %s2961_s12 = scalar_lea.vmem %s2960_s7, 256  ;;  %p2962_p6 = scmp.lt.s32.totalorder %s357_s16, %s2960_s7 }
  0x8d   : > { %p2957_p0 = pnand %p2955_p7, %p3259_p10  ;;  %p2963_p4 = scmp.lt.s32.totalorder %s2961_s12, %s2954_s5 }
  0x8f   : > { %p2958_p3 = pneg %p2957_p0  ;;  %p2964_p8 = por %p2963_p4, %p2962_p6 }
  0x91   : > { %p2965_p11 = pnand %p2964_p8, %p2958_p3 }
  0x93   : > { %2968 = shalt.err (!%p2965_p11)
}
  0x94   : > { %2720 = dma.hbm_to_vmem [thread:$0]  (!%p3241_p9), %s3308_s1, 128, %s357_s16, %s3253_s10  }
  0x95   : > { %p3758_p5 = scmp.ne.s32.totalorder %s3742_s13, 0 }
  0x96   : > { %s3349_s25 = sand.u32 (!%p3758_p5), 1, %s3067_s28   ;;  %p3759_p10 = scmp.ne.s32.totalorder (!%p3758_p5), %s3739_s11, 0 }
  0x97   : > { %372 = sbr.rel (%p3758_p5) target bundleno = 1971 (0x7b3), region = 48  ;;  %s3352_s14 = sshll.u32 (!%p3758_p5), %s3349_s25, 3 }
  0x98   : > { %s375_s23 = scalar_lea.sflag (!%p3758_p5), [#allocation3], %s3349_s25  ;;  %s378_s27 = scalar_lea.vmem (!%p3758_p5), [#allocation2], %s3352_s14 }
  0x9c   : > { %3038 = dma.done.wait (%p3759_p10), %s375_s23, 128  }
  0x9d   : > { %3040 = vsyncadd (%p3759_p10), %s375_s23, 4294967168  ;;  %s383_s1 = sand.u32 1, %s3169_s9   ;;  %s387_s10 = scalar_lea.vmem [#allocation5], %s3352_s14 }
  0x9e   : > { %s384_s13 = scalar_lea.sflag [#allocation6], %s383_s1 }
  0x9f   : > { %3042 = dma.done.wait (%p3759_p10), %s384_s13, 256  }
  0xa0   : > { %3044 = vsyncadd (%p3759_p10), %s384_s13, 4294967040  ;;  %s396_s15 = scalar_lea.vmem [#allocation7], %s3352_s14  ;;  %p3760_p9 = scmp.eq.s32.totalorder %s3169_s9, 0 }
  0xa2   : > { %3046 = dma.done.wait (%p3760_p9), [#allocation9], 8192   ;;  %p3761_p2 = pmov %p3760_p9 }
  0xa4   : > { %3048 = vsyncadd (%p3761_p2), [#allocation9], 4294959104  ;;  %p3762_p13 = pmov %p3761_p2 }
  0xa5   : > { %p3763_p1 = pmov %p3761_p2 }
  0xa6   : > { %3050 = dma.done.wait (%p3762_p13), [#allocation12], 2048  }
  0xa7   : > { %3052 = vsyncadd (%p3763_p1), [#allocation12], 4294965248  ;;  %v3087_v0 = vmov 0.0   ;;  %vm3088_vm0 = vmmov 0   ;;  %v498_v1 = vld [vmem:[#allocation8 + $0xf8] sm:$0xff]  ;;  %v602_v2 = vld [vmem:[#allocation10 + $0xf0] sm:$0xff] }
  0xa8   : > { %2534 = vmatprep.subr.mxu1 %v3087_v0  ;;  %2566 = vmatprep.mubr.msk.f32.mxu1 %vm3088_vm0, %v3087_v0  ;;  %v497_v3 = vld [vmem:[#allocation8 + $0xf0] sm:$0xff]  ;;  %v496_v4 = vld [vmem:[#allocation8 + $0xe8] sm:$0xff]  ;;  %v600_v5 = vld [vmem:[#allocation10 + $0xe0] sm:$0xff]  ;;  %s3089_s11 = smov 32   ;;  %s3090_s22 = smov 96   ;;  %vm1182_vm1 = vcmask 261120  }
  0xa9   : > { %563 = vmatprep.mubr.f32.mxu0 %v3087_v0  ;;  %499 = vmatprep.subr.mxu0 %v498_v1  ;;  %v495_v6 = vld [vmem:[#allocation8 + $0xe0] sm:$0xff]  ;;  %v494_v7 = vld [vmem:[#allocation8 + $0xd8] sm:$0xff]  ;;  %v598_v8 = vld [vmem:[#allocation10 + $0xd0] sm:$0xff]  ;;  %s3091_s24 = smov 64   ;;  %p460_p12 = scmp.lt.s32.totalorder %s3169_s9, 1  ;;  %vm1502_vm4 = vcmask 64512  }
  0xaa   : > { %2535 = vmatpush3.msra.mxu1 %v602_v2  ;;  %500 = vmatpush1.msra.mxu0 %v497_v3  ;;  %v493_v9 = vld [vmem:[#allocation8 + $0xd0] sm:$0xff]  ;;  %v492_v10 = vld [vmem:[#allocation8 + $0xc8] sm:$0xff]  ;;  %v596_v11 = vld [vmem:[#allocation10 + $0xc0] sm:$0xff]  ;;  %s3095_s30 = smov 8   ;;  %s3096_s17 = smov 24   ;;  %vm2098_vm5 = vcmask 523264  }
  0xab   : > { %2536 = vmatprep.subr.mxu1 %v3087_v0  ;;  %501 = vmatprep.subr.mxu0 %v496_v4  ;;  %v491_v12 = vld [vmem:[#allocation8 + $0xc0] sm:$0xff]  ;;  %v490_v13 = vld [vmem:[#allocation8 + $0xb8] sm:$0xff]  ;;  %v594_v14 = vld [vmem:[#allocation10 + $0xb0] sm:$0xff]  ;;  %s461_s16 = scalar_select %p460_p12, %s3169_s9, 1  ;;  %vm2100_vm6 = vcmask 785408   ;;  %vm1644_vm7 = vcmask 130048  }
  0xac   : > { %2537 = vmatpush3.msra.mxu1 %v600_v5  ;;  %502 = vmatpush1.msra.mxu0 %v495_v6  ;;  %v489_v15 = vld [vmem:[#allocation8 + $0xb0] sm:$0xff]  ;;  %v488_v16 = vld [vmem:[#allocation8 + $0xa8] sm:$0xff]  ;;  %v592_v17 = vld [vmem:[#allocation10 + $0xa0] sm:$0xff]  ;;  %s3097_s5 = smov 40   ;;  %s3098_s20 = smov 16   ;;  %vm1646_vm8 = vcmask 195584  }
  0xad   : > { %2538 = vmatprep.subr.mxu1 %v3087_v0  ;;  %503 = vmatprep.subr.mxu0 %v494_v7  ;;  %v487_v18 = vld [vmem:[#allocation8 + $0xa0] sm:$0xff]  ;;  %v486_v19 = vld [vmem:[#allocation8 + $0x98] sm:$0xff]  ;;  %v590_v20 = vld [vmem:[#allocation10 + $0x90] sm:$0xff]  ;;  %s2440_s4 = sshll.u32 %s461_s16, 1  ;;  %s3099_s7 = smov 48   ;;  %vm1649_vm9 = vcmask 326656  }
  0xae   : > { %2539 = vmatpush3.msra.mxu1 %v598_v8  ;;  %504 = vmatpush1.msra.mxu0 %v493_v9  ;;  %v485_v21 = vld [vmem:[#allocation8 + $0x90] sm:$0xff]  ;;  %v484_v22 = vld [vmem:[#allocation8 + $0x88] sm:$0xff]  ;;  %v588_v23 = vld [vmem:[#allocation10 + $0x80] sm:$0xff]  ;;  %v3092_v9 = vmov 1983009808   ;;  %s463_s18 = scalar_lea.vmem %s3711_s3, %s2440_s4  ;;  %s3100_s12 = smov 56  }
  0xaf   : > { %2540 = vmatprep.subr.mxu1 %v3087_v0  ;;  %505 = vmatprep.subr.mxu0 %v492_v10  ;;  %v483_v24 = vld [vmem:[#allocation8 + $0x80] sm:$0xff]  ;;  %v482_v25 = vld [vmem:[#allocation8 + $0x78] sm:$0xff]  ;;  %v586_v26 = vld [vmem:[#allocation10 + $0x70] sm:$0xff]  ;;  %v757_v10 = vunpack.c.l.s4 %v3092_v9  ;;  %s2439_s23 = sshll.u32 %s3349_s25, 2  ;;  %vm1651_vm10 = vcmask 392192   ;;  %vm1653_vm11 = vcmask 457728  }
  0xb0   : > { %2541 = vmatpush3.msra.mxu1 %v596_v11  ;;  %506 = vmatpush1.msra.mxu0 %v491_v12  ;;  %v481_v27 = vld [vmem:[#allocation8 + $0x70] sm:$0xff]  ;;  %v480_v28 = vld [vmem:[#allocation8 + $0x68] sm:$0xff]  ;;  %v584_v29 = vld [vmem:[#allocation10 + $0x60] sm:$0xff]  ;;  %v759_v11 = vlaneseq  ;;  %v3093_v12 = vmov 1934713408   ;;  %s459_s1 = scalar_lea.vmem [#allocation14], %s2439_s23 }
  0xb1   : > { %2542 = vmatprep.subr.mxu1 %v3087_v0  ;;  %507 = vmatprep.subr.mxu0 %v490_v13  ;;  %v479_v30 = vld [vmem:[#allocation8 + $0x60] sm:$0xff]  ;;  %v478_v31 = vld [vmem:[#allocation8 + $0x58] sm:$0xff]  ;;  %v582_v32 = vld [vmem:[#allocation10 + $0x50] sm:$0xff]  ;;  %v789_v13 = vunpack.c.l.s4 %v3093_v12  ;;  %s2233_s13 = sshll.u32 %s459_s1, 4  ;;  %vm1655_vm12 = vcmask 519168   ;;  %p3766_p0 = scmp.ne.s32.totalorder %s3747_s26, 0  ;;  %s3648_s13 = int_to_ptr.vmem [resolvable:$true] %s2233_s13 }
  0xb2   : > { %2543 = vmatpush3.msra.mxu1 %v594_v14  ;;  %508 = vmatpush1.msra.mxu0 %v489_v15  ;;  %v477_v33 = vld [vmem:[#allocation8 + $0x50] sm:$0xff]  ;;  %v476_v34 = vld [vmem:[#allocation8 + $0x48] sm:$0xff]  ;;  %v580_v35 = vld [vmem:[#allocation10 + $0x40] sm:$0xff]  ;;  %v758_v14 = vunpack.c.0.s8 %v757_v10  ;;  %v760_v15 = vshrl.u32 %v759_v11, 7  ;;  %s3101_s16 = smov [#allocation14]  }
  0xb3   : > { %2544 = vmatprep.subr.mxu1 %v3087_v0  ;;  %509 = vmatprep.subr.mxu0 %v488_v16  ;;  %v475_v36 = vld [vmem:[#allocation8 + $0x40] sm:$0xff]  ;;  %v474_v37 = vld [vmem:[#allocation8 + $0x38] sm:$0xff]  ;;  %v578_v38 = vld [vmem:[#allocation10 + $0x30] sm:$0xff]  ;;  %s2973_s4 = sshll.u32 %s3101_s16, 4  ;;  %s2974_s4 = int_to_ptr.vmem [resolvable:$false] %s2973_s4 }
  0xb4   : > { %2545 = vmatpush3.msra.mxu1 %v592_v17  ;;  %510 = vmatpush1.msra.mxu0 %v487_v18  ;;  %v473_v39 = vld [vmem:[#allocation8 + $0x30] sm:$0xff]  ;;  %v472_v40 = vld [vmem:[#allocation8 + $0x28] sm:$0xff]  ;;  %v576_v41 = vld [vmem:[#allocation10 + $0x20] sm:$0xff]  ;;  %v790_v18 = vunpack.c.0.s8 %v789_v13  ;;  %s2975_s19 = scalar_lea.vmem %s2974_s4, 128  ;;  %p2976_p4 = scmp.lt.s32.totalorder %s3648_s13, %s2974_s4 }
  0xb5   : > { %2546 = vmatprep.subr.mxu1 %v3087_v0  ;;  %511 = vmatprep.subr.mxu0 %v486_v19  ;;  %v471_v42 = vld [vmem:[#allocation8 + $0x20] sm:$0xff]  ;;  %v470_v43 = vld [vmem:[#allocation8 + $0x18] sm:$0xff]  ;;  %v574_v44 = vld [vmem:[#allocation10 + $0x10] sm:$0xff]  ;;  %v3442_v19 = vsub.s32 %v758_v14, %v760_v15 }
  0xb6   : > { %2547 = vmatpush3.msra.mxu1 %v590_v20  ;;  %512 = vmatpush1.msra.mxu0 %v485_v21  ;;  %v469_v45 = vld [vmem:[#allocation8 + $0x10] sm:$0xff]  ;;  %v468_v46 = vld [vmem:[#allocation8 + $0x8] sm:$0xff]  ;;  %v572_v47 = vld [vmem:[#allocation10] sm:$0xff] }
  0xb7   : > { %2548 = vmatprep.subr.mxu1 %v3087_v0  ;;  %513 = vmatprep.subr.mxu0 %v484_v22  ;;  %v467_v48 = vld [vmem:[#allocation8] sm:$0xff]  ;;  %v466_v50 = vld [vmem:[%s378_s27] sm:$0xff]  ;;  %v601_v56 = vld [vmem:[#allocation10 + $0xe8] sm:$0xff]  ;;  %s2464_s27 = sshll.u32 %s3169_s9, 6 }
  0xb8   : > { %2549 = vmatpush3.msra.mxu1 %v588_v23  ;;  %514 = vmatpush1.msra.mxu0 %v483_v24  ;;  %v570_v49 = vld [vmem:[%s387_s10] sm:$0xff]  ;;  %v603_v55 = vld [vmem:[#allocation10 + $0xf8] sm:$0xff] }
  0xb9   : > { %2550 = vmatprep.subr.mxu1 %v3087_v0  ;;  %515 = vmatprep.subr.mxu0 %v482_v25  ;;  %v599_v57 = vld [vmem:[#allocation10 + $0xd8] sm:$0xff]  ;;  %v597_v58 = vld [vmem:[#allocation10 + $0xc8] sm:$0xff] }
  0xba   : > { %2551 = vmatpush3.msra.mxu1 %v586_v26  ;;  %516 = vmatpush1.msra.mxu0 %v481_v27  ;;  %v595_v59 = vld [vmem:[#allocation10 + $0xb8] sm:$0xff]  ;;  %v593_v60 = vld [vmem:[#allocation10 + $0xa8] sm:$0xff]  ;;  %v3446_v26 = vsub.s32 %v790_v18, %v760_v15 }
  0xbb   : > { %2552 = vmatprep.subr.mxu1 %v3087_v0  ;;  %517 = vmatprep.subr.mxu0 %v480_v28  ;;  %v591_v61 = vld [vmem:[#allocation10 + $0x98] sm:$0xff]  ;;  %v589_v62 = vld [vmem:[#allocation10 + $0x88] sm:$0xff] }
  0xbc   : > { %2553 = vmatpush3.msra.mxu1 %v584_v29  ;;  %518 = vmatpush1.msra.mxu0 %v479_v30  ;;  %v587_v63 = vld [vmem:[#allocation10 + $0x78] sm:$0xff]  ;;  %v585_v1 = vld [vmem:[#allocation10 + $0x68] sm:$0xff] }
  0xbd   : > { %2554 = vmatprep.subr.mxu1 %v3087_v0  ;;  %519 = vmatprep.subr.mxu0 %v478_v31  ;;  %v583_v2 = vld [vmem:[#allocation10 + $0x58] sm:$0xff]  ;;  %v581_v3 = vld [vmem:[#allocation10 + $0x48] sm:$0xff] }
  0xbe   : > { %2555 = vmatpush3.msra.mxu1 %v582_v32  ;;  %520 = vmatpush1.msra.mxu0 %v477_v33  ;;  %v579_v4 = vld [vmem:[#allocation10 + $0x38] sm:$0xff]  ;;  %v577_v5 = vld [vmem:[#allocation10 + $0x28] sm:$0xff] }
  0xbf   : > { %2556 = vmatprep.subr.mxu1 %v3087_v0  ;;  %521 = vmatprep.subr.mxu0 %v476_v34  ;;  %v575_v6 = vld [vmem:[#allocation10 + $0x18] sm:$0xff]  ;;  %v573_v7 = vld [vmem:[#allocation10 + $0x8] sm:$0xff] }
  0xc0   : > { %2557 = vmatpush3.msra.mxu1 %v580_v35  ;;  %522 = vmatpush1.msra.mxu0 %v475_v36  ;;  %v571_v8 = vld [vmem:[%s396_s15] sm:$0xff] }
  0xc1   : > { %2558 = vmatprep.subr.mxu1 %v3087_v0  ;;  %523 = vmatprep.subr.mxu0 %v474_v37 }
  0xc2   : > { %2559 = vmatpush3.msra.mxu1 %v578_v38  ;;  %524 = vmatpush1.msra.mxu0 %v473_v39 }
  0xc3   : > { %2560 = vmatprep.subr.mxu1 %v3087_v0  ;;  %525 = vmatprep.subr.mxu0 %v472_v40 }
  0xc4   : > { %2561 = vmatpush3.msra.mxu1 %v576_v41  ;;  %526 = vmatpush1.msra.mxu0 %v471_v42 }
  0xc5   : > { %2562 = vmatprep.subr.mxu1 %v3087_v0  ;;  %527 = vmatprep.subr.mxu0 %v470_v43 }
  0xc6   : > { %2563 = vmatpush3.msra.mxu1 %v574_v44  ;;  %528 = vmatpush1.msra.mxu0 %v469_v45 }
  0xc7   : > { %2564 = vmatprep.subr.mxu1 %v3087_v0  ;;  %529 = vmatprep.subr.mxu0 %v468_v46 }
  0xc8   : > { %2565 = vmatpush3.msra.mxu1 %v572_v47  ;;  %530 = vmatpush1.msra.mxu0 %v467_v48 }
  0xc9   : > { %2567 = vmatmul.mubr.f32.vlgmr.msra.gmra.mxu1 %v570_v49  ;;  %564 = vmatmul.mubr.f32.vlgmr.msra.gmra.mxu0 %v466_v50 }
  0xca   : > { %2604 = vmatprep.subr.mxu1 %v3087_v0  ;;  %2606 = vmatprep.mubr.msk.f32.mxu1 %vm3088_vm0, %v3087_v0 }
  0xcb   : > { %2569 = vmatprep.subr.mxu0 %v3087_v0  ;;  %2601 = vmatprep.mubr.msk.f32.mxu0 %vm3088_vm0, %v3087_v0 }
  0xcc   : > { %2570 = vmatpush3.msra.mxu0 %v603_v55 }
  0xcd   : > { %2571 = vmatprep.subr.mxu0 %v3087_v0 }
  0xce   : > { %2572 = vmatpush3.msra.mxu0 %v601_v56 }
  0xcf   : > { %2573 = vmatprep.subr.mxu0 %v3087_v0 }
  0xd0   : > { %2574 = vmatpush3.msra.mxu0 %v599_v57 }
  0xd1   : > { %2575 = vmatprep.subr.mxu0 %v3087_v0 }
  0xd2   : > { %2576 = vmatpush3.msra.mxu0 %v597_v58 }
  0xd3   : > { %2577 = vmatprep.subr.mxu0 %v3087_v0 }
  0xd4   : > { %2578 = vmatpush3.msra.mxu0 %v595_v59 }
  0xd5   : > { %2579 = vmatprep.subr.mxu0 %v3087_v0 }
  0xd6   : > { %2580 = vmatpush3.msra.mxu0 %v593_v60 }
  0xd7   : > { %2581 = vmatprep.subr.mxu0 %v3087_v0 }
  0xd8   : > { %2582 = vmatpush3.msra.mxu0 %v591_v61 }
  0xd9   : > { %2583 = vmatprep.subr.mxu0 %v3087_v0 }
  0xda   : > { %2584 = vmatpush3.msra.mxu0 %v589_v62 }
  0xdb   : > { %2585 = vmatprep.subr.mxu0 %v3087_v0 }
  0xdc   : > { %2586 = vmatpush3.msra.mxu0 %v587_v63 }
  0xdd   : > { %2587 = vmatprep.subr.mxu0 %v3087_v0 }
  0xde   : > { %2588 = vmatpush3.msra.mxu0 %v585_v1 }
  0xdf   : > { %2589 = vmatprep.subr.mxu0 %v3087_v0 }
  0xe0   : > { %2590 = vmatpush3.msra.mxu0 %v583_v2 }
  0xe1   : > { %2591 = vmatprep.subr.mxu0 %v3087_v0 }
  0xe2   : > { %2592 = vmatpush3.msra.mxu0 %v581_v3 }
  0xe3   : > { %2593 = vmatprep.subr.mxu0 %v3087_v0 }
  0xe4   : > { %2594 = vmatpush3.msra.mxu0 %v579_v4 }
  0xe5   : > { %2595 = vmatprep.subr.mxu0 %v3087_v0 }
  0xe6   : > { %2596 = vmatpush3.msra.mxu0 %v577_v5 }
  0xe7   : > { %2597 = vmatprep.subr.mxu0 %v3087_v0 }
  0xe8   : > { %2598 = vmatpush3.msra.mxu0 %v575_v6 }
  0xe9   : > { %2599 = vmatprep.subr.mxu0 %v3087_v0 }
  0xea   : > { %2600 = vmatpush3.msra.mxu0 %v573_v7 }
  0xeb   : > { %2602 = vmatmul.mubr.f32.vlgmr.msra.gmra.mxu0 %v571_v8  ;;  %2644 = vmatprep.subr.mxu0 %v3087_v0 }
  0xec   : > { %2676 = vmatprep.mubr.msk.f32.mxu0 %vm3088_vm0, %v3087_v0 }
 0x189   : > { %v3404_v51 = vpop.f32.mrf.mxu1  ;;  %v3410_v52 = vpop.f32.mrf.mxu0 }
 0x18a   : > { %897 = vrot.lane.b32.xlu1 %v3404_v51, %s3089_s11  ;;  %891 = vrot.lane.b32.xlu0 %v3404_v51, %s3090_s22 }
 0x18b   : > { %v2568_v53 = vpop.f32.mrf.mxu1  ;;  %v3412_v54 = vpop.f32.mrf.mxu0 }
 0x18e   : > { %894 = vrot.lane.b32.xlu0 %v3404_v51, %s3091_s24  ;;  %745 = vrot.lane.b32.xlu1 %v3412_v54, %s3090_s22 }
 0x192   : > { %748 = vrot.lane.b32.xlu0 %v3412_v54, %s3091_s24  ;;  %751 = vrot.lane.b32.xlu1 %v3412_v54, %s3089_s11 }
 0x1fc   : > { %v898_v16 = vpop.permute.xlu1 %897  ;;  %v892_v17 = vpop.permute.xlu0 %891 }
 0x1fd   : > { %v916_v20 = vcombine.low %v892_v17, %v898_v16  ;;  %v917_v21 = vcombine.high %v892_v17, %v898_v16 }
 0x1ff   : > { %v924_v27 = vrot.slane %v916_v20, %v3442_v19  ;;  %v931_v28 = vrot.slane %v917_v21, %v3442_v19 }
 0x200   : > { %v895_v22 = vpop.permute.xlu0 %894  ;;  %v746_v23 = vpop.permute.xlu1 %745 }
 0x201   : > { %v900_v24 = vcombine.low %v3404_v51, %v895_v22  ;;  %v901_v25 = vcombine.high %v3404_v51, %v895_v22 }
 0x203   : > { %v908_v29 = vrot.slane %v900_v24, %v3442_v19  ;;  %v915_v30 = vrot.slane %v901_v25, %v3442_v19 }
 0x204   : > { %v749_v31 = vpop.permute.xlu0 %748  ;;  %v752_v32 = vpop.permute.xlu1 %751 }
 0x205   : > { %v932_v33 = vcombine.low %v908_v29, %v924_v27  ;;  %v933_v34 = vcombine.high %v908_v29, %v924_v27  ;;  %v948_v35 = vcombine.low %v915_v30, %v931_v28  ;;  %v949_v36 = vcombine.high %v915_v30, %v931_v28 }
 0x206   : > { %v754_v37 = vcombine.low %v3412_v54, %v749_v31  ;;  %v755_v38 = vcombine.high %v3412_v54, %v749_v31  ;;  %v770_v39 = vcombine.low %v746_v23, %v752_v32  ;;  %v771_v40 = vcombine.high %v746_v23, %v752_v32 }
 0x207   : > { %v940_v41 = vrot.slane %v932_v33, %v3446_v26  ;;  %v947_v42 = vrot.slane %v933_v34, %v3446_v26  ;;  %v956_v43 = vrot.slane %v948_v35, %v3446_v26  ;;  %v963_v44 = vrot.slane %v949_v36, %v3446_v26 }
 0x208   : > { %v762_v45 = vrot.slane %v754_v37, %v3442_v19  ;;  %v769_v46 = vrot.slane %v755_v38, %v3442_v19  ;;  %v778_v47 = vrot.slane %v770_v39, %v3442_v19  ;;  %v785_v48 = vrot.slane %v771_v40, %v3442_v19  ;;  %v1491_v37 = vld [vmem:[%s463_s18] sm:$0x3] }
 0x209   : > { %v968_v49 = vcombine.low %v940_v41, %v947_v42  ;;  %v2443_v50 = vcombine.high %v940_v41, %v947_v42  ;;  %v984_v51 = vcombine.low %v956_v43, %v963_v44  ;;  %v2444_v53 = vcombine.high %v956_v43, %v963_v44 }
 0x20a   : > { %v786_v54 = vcombine.low %v762_v45, %v778_v47  ;;  %v787_v55 = vcombine.high %v762_v45, %v778_v47  ;;  %v802_v56 = vcombine.low %v769_v46, %v785_v48  ;;  %v803_v57 = vcombine.high %v769_v46, %v785_v48 }
 0x20b   : > { %v975_v58 = vrot.slane %v968_v49, %v3442_v19  ;;  %v983_v59 = vrot.slane %v2443_v50, %v3442_v19  ;;  %v991_v60 = vrot.slane %v984_v51, %v3442_v19  ;;  %v999_v61 = vrot.slane %v2444_v53, %v3442_v19 }
 0x20c   : > { %v794_v62 = vrot.slane %v786_v54, %v3446_v26  ;;  %v801_v63 = vrot.slane %v787_v55, %v3446_v26  ;;  %v810_v1 = vrot.slane %v802_v56, %v3446_v26  ;;  %v817_v2 = vrot.slane %v803_v57, %v3446_v26 }
 0x20d   : > { %v1000_v3 = vcombine.low %v975_v58, %v983_v59  ;;  %v1016_v4 = vcombine.low %v991_v60, %v999_v61  ;;  %v1001_v18 = vcombine.high %v975_v58, %v983_v59  ;;  %v1017_v20 = vcombine.high %v991_v60, %v999_v61 }
 0x20e   : > { %v822_v5 = vcombine.low %v794_v62, %v801_v63  ;;  %v2441_v6 = vcombine.high %v794_v62, %v801_v63  ;;  %v838_v7 = vcombine.low %v810_v1, %v817_v2  ;;  %v2442_v8 = vcombine.high %v810_v1, %v817_v2  ;;  %v740_v63 = vpop.f32.mrf.mxu0 }
 0x20f   : > { %v1008_v9 = vrot.slane %v1000_v3, %v3446_v26  ;;  %v1024_v10 = vrot.slane %v1016_v4, %v3446_v26  ;;  %v1015_v28 = vrot.slane %v1001_v18, %v3446_v26  ;;  %v1031_v29 = vrot.slane %v1017_v20, %v3446_v26 }
 0x210   : > { %v829_v11 = vrot.slane %v822_v5, %v3442_v19  ;;  %v837_v12 = vrot.slane %v2441_v6, %v3442_v19  ;;  %v845_v13 = vrot.slane %v838_v7, %v3442_v19  ;;  %v853_v14 = vrot.slane %v2442_v8, %v3442_v19  ;;  %v2603_v1 = vpop.f32.mrf.mxu0 }
 0x211   : > { %v1032_v15 = vcombine.low %v1008_v9, %v1024_v10  ;;  %v1033_v27 = vcombine.high %v1008_v9, %v1024_v10  ;;  %v1034_v33 = vcombine.low %v1015_v28, %v1031_v29  ;;  %v1035_v35 = vcombine.high %v1015_v28, %v1031_v29 }
 0x212   : > { %v854_v16 = vcombine.low %v829_v11, %v837_v12  ;;  %v870_v17 = vcombine.low %v845_v13, %v853_v14  ;;  %v855_v23 = vcombine.high %v829_v11, %v837_v12  ;;  %v871_v24 = vcombine.high %v845_v13, %v853_v14 }
 0x213   : > { %2605 = vmatpush3.xpose.msk.msra.mxu1 %vm1182_vm1, %v1032_v15  ;;  %vm1492_vm2 = vnez %v1491_v37  ;;  %v3094_v38 = vmov 0  }
 0x214   : > { %2609 = vmatprep.subr.mxu1 %v3087_v0  ;;  %v862_v21 = vrot.slane %v854_v16, %v3446_v26  ;;  %v878_v22 = vrot.slane %v870_v17, %v3446_v26  ;;  %v869_v31 = vrot.slane %v855_v23, %v3446_v26  ;;  %v885_v32 = vrot.slane %v871_v24, %v3446_v26 }
 0x215   : > { %v1493_v39 = vsel %vm1492_vm2, 16843009, %v3094_v38 }
 0x216   : > { %v886_v25 = vcombine.low %v862_v21, %v878_v22  ;;  %v887_v30 = vcombine.high %v862_v21, %v878_v22  ;;  %v888_v34 = vcombine.low %v869_v31, %v885_v32  ;;  %v889_v36 = vcombine.high %v869_v31, %v885_v32 }
 0x217   : > { %v1494_v40 = vunpack.c.0.s8 %v1493_v39 }
 0x218   : > { %2607 = vmatmul.mubr.msk.f32.vlgmr.msra.gmra.mxu1 %vm1182_vm1, %v886_v25 }
 0x219   : > { %2610 = vmatpush3.xpose.msk.msra.mxu1 %vm1182_vm1, %v1033_v27  ;;  %2611 = vmatprep.mubr.msk.f32.mxu1 %vm3088_vm0, %v3087_v0  ;;  %vm3507_vm3 = vcmp.ne.s32.totalorder %v1494_v40, 0 }
 0x21a   : > { %2614 = vmatprep.subr.mxu1 %v3087_v0 }
 0x21c   : > { %2612 = vmatmul.mubr.msk.f32.vlgmr.msra.gmra.mxu1 %vm1182_vm1, %v887_v30 }
 0x21d   : > { %2615 = vmatpush3.xpose.msk.msra.mxu1 %vm1182_vm1, %v1034_v33  ;;  %2616 = vmatprep.mubr.msk.f32.mxu1 %vm3088_vm0, %v3087_v0 }
 0x21e   : > { %2619 = vmatprep.subr.mxu1 %v3087_v0 }
 0x220   : > { %2617 = vmatmul.mubr.msk.f32.vlgmr.msra.gmra.mxu1 %vm1182_vm1, %v888_v34 }
 0x221   : > { %2620 = vmatpush3.xpose.msk.msra.mxu1 %vm1182_vm1, %v1035_v35  ;;  %2621 = vmatprep.mubr.msk.f32.mxu1 %vm3088_vm0, %v3087_v0 }
 0x222   : > { %2624 = vmatprep.subr.mxu1 %v3087_v0 }
 0x224   : > { %2622 = vmatmul.mubr.msk.f32.vlgmr.msra.gmra.mxu1 %vm1182_vm1, %v889_v36 }
 0x225   : > { %2626 = vmatprep.mubr.msk.f32.mxu1 %vm3088_vm0, %v3087_v0 }
 0x2d8   : > { %v1255_v41 = vpop.f32.mrf.mxu1 }
 0x2d9   : > { %v1487_v43 = vmul.f32 0.17677669, %v1255_v41 }
 0x2da   : > { %v2608_v44 = vpop.f32.mrf.mxu1 }
 0x2db   : > { %v1498_v45 = vsel %vm3507_vm3, -1e+09, %v1487_v43 }
 0x2dc   : > { %v1331_v46 = vpop.f32.mrf.mxu1  ;;  %v1503_v47 = vsel %vm1502_vm4, %v1498_v45, -inf }
 0x2dd   : > { %v1488_v48 = vmul.f32 0.17677669, %v1331_v46  ;;  %1504 = vmax.xlane.f32.xlu0 %v1503_v47 }
 0x2de   : > { %v2613_v49 = vpop.f32.mrf.mxu1 }
 0x2df   : > { %v1499_v50 = vsel %vm3507_vm3, -1e+09, %v1488_v48 }
 0x2e0   : > { %v1407_v51 = vpop.f32.mrf.mxu1  ;;  %v1506_v53 = vsel %vm1502_vm4, %v1499_v50, -inf }
 0x2e1   : > { %v1489_v54 = vmul.f32 0.17677669, %v1407_v51  ;;  %1507 = vmax.xlane.f32.xlu1 %v1506_v53 }
 0x2e2   : > { %v2618_v55 = vpop.f32.mrf.mxu1 }
 0x2e3   : > { %v1500_v56 = vsel %vm3507_vm3, -1e+09, %v1489_v54 }
 0x2e4   : > { %v1483_v57 = vpop.f32.mrf.mxu1  ;;  %v1509_v58 = vsel %vm1502_vm4, %v1500_v56, -inf }
 0x2e5   : > { %v1490_v59 = vmul.f32 0.17677669, %v1483_v57  ;;  %1510 = vmax.xlane.f32.xlu0 %v1509_v58 }
 0x2e6   : > { %v2623_v60 = vpop.f32.mrf.mxu1 }
 0x2e7   : > { %v1501_v61 = vsel %vm3507_vm3, -1e+09, %v1490_v59 }
 0x2e8   : > { %v1512_v62 = vsel %vm1502_vm4, %v1501_v61, -inf }
 0x2e9   : > { %1513 = vmax.xlane.f32.xlu0 %v1512_v62 }
 0x366   : > { %v1505_v2 = vpop.xlane.xlu0 %1504 }
 0x367   : > { %v1515_v3 = vsub.f32 %v1498_v45, %v1505_v2 }
 0x369   : > { %v1519_v4 = vmul.f32 1.442695, %v1515_v3 }
 0x36a   : > { %v1508_v5 = vpop.xlane.xlu1 %1507 }
 0x36b   : > { %2789 = vpow2.f32 %v1519_v4  ;;  %v1516_v6 = vsub.f32 %v1499_v50, %v1508_v5 }
 0x36d   : > { %v1521_v7 = vmul.f32 1.442695, %v1516_v6 }
 0x36e   : > { %v1511_v12 = vpop.xlane.xlu0 %1510 }
 0x36f   : > { %2791 = vpow2.f32 %v1521_v7  ;;  %v1517_v13 = vsub.f32 %v1500_v56, %v1511_v12 }
 0x371   : > { %v1523_v15 = vmul.f32 1.442695, %v1517_v13 }
 0x372   : > { %v1514_v14 = vpop.xlane.xlu0 %1513 }
 0x373   : > { %v1518_v16 = vsub.f32 %v1501_v61, %v1514_v14  ;;  %2793 = vpow2.f32 %v1523_v15 }
 0x375   : > { %v1525_v17 = vmul.f32 1.442695, %v1518_v16 }
 0x377   : > { %2795 = vpow2.f32 %v1525_v17 }
 0x378   : > { %v3523_v8 = vpop.eup %2789 }
 0x379   : > { %v1527_v9 = vsel %vm1502_vm4, %v3523_v8, 0.0 }
 0x37a   : > { %1528 = vadd.xlane.f32.xlu1 %v1527_v9 }
 0x37c   : > { %v3527_v10 = vpop.eup %2791 }
 0x37d   : > { %v1530_v11 = vsel %vm1502_vm4, %v3527_v10, 0.0 }
 0x37e   : > { %1531 = vadd.xlane.f32.xlu0 %v1530_v11 }
 0x380   : > { %v2794_v18 = vpop.eup %2793 }
 0x381   : > { %v1533_v20 = vsel %vm1502_vm4, %v2794_v18, 0.0 }
 0x384   : > { %v2796_v21 = vpop.eup %2795 }
 0x385   : > { %v1536_v22 = vsel %vm1502_vm4, %v2796_v21, 0.0 }
 0x38b   : > { %1040 = vrot.lane.b32.xlu1 %v740_v63, %s3091_s24 }
 0x394   : > { %1037 = vrot.lane.b32.xlu0 %v740_v63, %s3090_s22 }
 0x3af   : > { %1534 = vadd.xlane.f32.xlu1 %v1533_v20 }
 0x3b3   : > { %1537 = vadd.xlane.f32.xlu0 %v1536_v22 }
 0x3c0   : > { %1043 = vrot.lane.b32.xlu1 %v740_v63, %s3089_s11 }
 0x403   : > { %v1529_v23 = vpop.xlane.xlu1 %1528 }
 0x404   : > { %2797 = vrcp.f32 %v1529_v23 }
 0x407   : > { %v1532_v24 = vpop.xlane.xlu0 %1531  ;;  %v1041_v25 = vpop.permute.xlu1 %1040 }
 0x408   : > { %v1046_v29 = vcombine.low %v740_v63, %v1041_v25  ;;  %v1047_v30 = vcombine.high %v740_v63, %v1041_v25 }
 0x40a   : > { %v1054_v35 = vrot.slane %v1046_v29, %v3442_v19  ;;  %v1061_v36 = vrot.slane %v1047_v30, %v3442_v19 }
 0x40b   : > { %v1038_v27 = vpop.permute.xlu0 %1037 }
 0x411   : > { %v2798_v47 = vpop.eup %2797 }
 0x412   : > { %v1543_v61 = vmul.f32 %v2798_v47, %v3523_v8 }
 0x438   : > { %v1535_v28 = vpop.xlane.xlu1 %1534 }
 0x439   : > { %2799 = vrcp.f32 %v1535_v28 }
 0x43a   : > { %2801 = vrcp.f32 %v1532_v24 }
 0x43c   : > { %v1044_v31 = vpop.permute.xlu1 %1043  ;;  %v1538_v32 = vpop.xlane.xlu0 %1537 }
 0x43d   : > { %v1062_v33 = vcombine.low %v1038_v27, %v1044_v31  ;;  %v1063_v34 = vcombine.high %v1038_v27, %v1044_v31  ;;  %2803 = vrcp.f32 %v1538_v32 }
 0x43f   : > { %v1070_v37 = vrot.slane %v1062_v33, %v3442_v19  ;;  %v1077_v38 = vrot.slane %v1063_v34, %v3442_v19  ;;  %v2117_v33 = vld [vmem:[#allocation11 + $0x78] sm:$0xff]  ;;  %v2116_v34 = vld [vmem:[#allocation11 + $0x70] sm:$0xff] }
 0x440   : > { %2645 = vmatpush3.msra.mxu0 %v2117_v33 }
 0x441   : > { %v1078_v39 = vcombine.low %v1054_v35, %v1070_v37  ;;  %v1079_v40 = vcombine.high %v1054_v35, %v1070_v37  ;;  %v1094_v41 = vcombine.low %v1061_v36, %v1077_v38  ;;  %v1095_v42 = vcombine.high %v1061_v36, %v1077_v38  ;;  %2646 = vmatprep.subr.mxu0 %v3087_v0  ;;  %v2115_v35 = vld [vmem:[#allocation11 + $0x68] sm:$0xff]  ;;  %v2114_v36 = vld [vmem:[#allocation11 + $0x60] sm:$0xff]  ;;  %v2113_v37 = vld [vmem:[#allocation11 + $0x58] sm:$0xff] }
 0x442   : > { %2647 = vmatpush3.msra.mxu0 %v2116_v34  ;;  %v2112_v38 = vld [vmem:[#allocation11 + $0x50] sm:$0xff] }
 0x443   : > { %v1086_v43 = vrot.slane %v1078_v39, %v3446_v26  ;;  %v1093_v44 = vrot.slane %v1079_v40, %v3446_v26  ;;  %v1102_v45 = vrot.slane %v1094_v41, %v3446_v26  ;;  %v1109_v46 = vrot.slane %v1095_v42, %v3446_v26  ;;  %2648 = vmatprep.subr.mxu0 %v3087_v0  ;;  %v2111_v39 = vld [vmem:[#allocation11 + $0x48] sm:$0xff]  ;;  %v2110_v40 = vld [vmem:[#allocation11 + $0x40] sm:$0xff]  ;;  %v2109_v41 = vld [vmem:[#allocation11 + $0x38] sm:$0xff] }
 0x444   : > { %2649 = vmatpush3.msra.mxu0 %v2115_v35  ;;  %v2108_v42 = vld [vmem:[#allocation11 + $0x30] sm:$0xff] }
 0x445   : > { %v1114_v48 = vcombine.low %v1086_v43, %v1093_v44  ;;  %v2445_v49 = vcombine.high %v1086_v43, %v1093_v44  ;;  %v1130_v50 = vcombine.low %v1102_v45, %v1109_v46  ;;  %v2446_v51 = vcombine.high %v1102_v45, %v1109_v46  ;;  %2650 = vmatprep.subr.mxu0 %v3087_v0  ;;  %v2107_v43 = vld [vmem:[#allocation11 + $0x28] sm:$0xff] }
 0x446   : > { %v2800_v53 = vpop.eup %2799  ;;  %2651 = vmatpush3.msra.mxu0 %v2114_v36 }
 0x447   : > { %v1545_v54 = vmul.f32 %v2800_v53, %v2794_v18  ;;  %v1121_v55 = vrot.slane %v1114_v48, %v3442_v19  ;;  %v1129_v56 = vrot.slane %v2445_v49, %v3442_v19  ;;  %v1137_v57 = vrot.slane %v1130_v50, %v3442_v19  ;;  %v2802_v58 = vpop.eup %2801  ;;  %2652 = vmatprep.subr.mxu0 %v3087_v0 }
 0x448   : > { %v1145_v59 = vrot.slane %v2446_v51, %v3442_v19  ;;  %v1544_v3 = vmul.f32 %v2802_v58, %v3527_v10  ;;  %2653 = vmatpush3.msra.mxu0 %v2113_v37 }
 0x449   : > { %v1146_v60 = vcombine.low %v1121_v55, %v1129_v56  ;;  %v1547_v4 = vcombine.low %v1543_v61, %v1545_v54  ;;  %v1147_v6 = vcombine.high %v1121_v55, %v1129_v56  ;;  %v1548_v9 = vcombine.high %v1543_v61, %v1545_v54  ;;  %2654 = vmatprep.subr.mxu0 %v3087_v0 }
 0x44a   : > { %v2804_v62 = vpop.eup %2803  ;;  %v1162_v63 = vcombine.low %v1137_v57, %v1145_v59  ;;  %v1163_v7 = vcombine.high %v1137_v57, %v1145_v59  ;;  %2655 = vmatpush3.msra.mxu0 %v2112_v38 }
 0x44b   : > { %v1546_v1 = vmul.f32 %v2804_v62, %v2796_v21  ;;  %v1154_v2 = vrot.slane %v1146_v60, %v3446_v26  ;;  %v1555_v14 = vrot.slane %v1547_v4, %v3442_v19  ;;  %v1161_v10 = vrot.slane %v1147_v6, %v3446_v26  ;;  %2656 = vmatprep.subr.mxu0 %v3087_v0 }
 0x44c   : > { %v1170_v5 = vrot.slane %v1162_v63, %v3446_v26  ;;  %v1177_v17 = vrot.slane %v1163_v7, %v3446_v26  ;;  %v3560_v18 = vrot.slane %v1548_v9, %v3442_v19  ;;  %2657 = vmatpush3.msra.mxu0 %v2111_v39 }
 0x44d   : > { %v1563_v11 = vcombine.low %v1544_v3, %v1546_v1  ;;  %v1564_v12 = vcombine.high %v1544_v3, %v1546_v1  ;;  %2658 = vmatprep.subr.mxu0 %v3087_v0 }
 0x44e   : > { %v1178_v13 = vcombine.low %v1154_v2, %v1170_v5  ;;  %v1179_v16 = vcombine.high %v1154_v2, %v1170_v5  ;;  %v1180_v24 = vcombine.low %v1161_v10, %v1177_v17  ;;  %v1181_v28 = vcombine.high %v1161_v10, %v1177_v17  ;;  %2659 = vmatpush3.msra.mxu0 %v2110_v40  ;;  %v2106_v2 = vld [vmem:[#allocation11 + $0x20] sm:$0xff] }
 0x44f   : > { %v1571_v8 = vrot.slane %v1563_v11, %v3442_v19  ;;  %v3555_v15 = vrot.slane %v1564_v12, %v3442_v19  ;;  %2660 = vmatprep.subr.mxu0 %v3087_v0 }
 0x450   : > { %2625 = vmatpush3.msra.mxu1 %v1178_v13  ;;  %2661 = vmatpush3.msra.mxu0 %v2109_v41 }
 0x451   : > { %2627 = vmatmul.mubr.msk.f32.vlgmr.msra.gmra.mxu1 %vm1502_vm4, %v1543_v61  ;;  %2629 = vmatprep.subr.mxu1 %v3087_v0  ;;  %v1579_v20 = vcombine.low %v1555_v14, %v1571_v8  ;;  %v1580_v21 = vcombine.high %v1555_v14, %v1571_v8  ;;  %v1596_v22 = vcombine.high %v3560_v18, %v3555_v15  ;;  %v2104_v14 = vld [vmem:[#allocation11 + $0x10] sm:$0xff]  ;;  %v2103_v8 = vld [vmem:[#allocation11 + $0x8] sm:$0xff] }
 0x452   : > { %2630 = vmatpush3.msra.mxu1 %v1179_v16  ;;  %2631 = vmatprep.mubr.msk.f32.mxu1 %vm3088_vm0, %v3087_v0  ;;  %v1595_v30 = vcombine.low %v3560_v18, %v3555_v15 }
 0x453   : > { %2634 = vmatprep.subr.mxu1 %v3087_v0  ;;  %v3570_v23 = vrot.slane %v1579_v20, %v3446_v26  ;;  %v3576_v27 = vrot.slane %v1580_v21, %v3446_v26  ;;  %2662 = vmatprep.subr.mxu0 %v3087_v0 }
 0x454   : > { %v1603_v31 = vrot.slane %v1595_v30, %v3446_v26  ;;  %2663 = vmatpush3.msra.mxu0 %v2108_v42 }
 0x455   : > { %2632 = vmatmul.mubr.msk.f32.vlgmr.msra.gmra.mxu1 %vm1502_vm4, %v1544_v3  ;;  %v1611_v25 = vcombine.high %v3570_v23, %v3087_v0  ;;  %v1612_v29 = vcombine.high %v3576_v27, %v3087_v0  ;;  %2664 = vmatprep.subr.mxu0 %v3087_v0  ;;  %v2105_v3 = vld [vmem:[#allocation11 + $0x18] sm:$0xff] }
 0x456   : > { %2635 = vmatpush3.msra.mxu1 %v1180_v24  ;;  %2636 = vmatprep.mubr.msk.f32.mxu1 %vm3088_vm0, %v3087_v0  ;;  %v1613_v32 = vcombine.high %v1603_v31, %v3087_v0 }
 0x457   : > { %2639 = vmatprep.subr.mxu1 %v3087_v0  ;;  %1616 = vrot.lane.b32.xlu0 %v1611_v25, %s3095_s30 }
 0x458   : > { %2665 = vmatpush3.msra.mxu0 %v2107_v43 }
 0x459   : > { %2637 = vmatmul.mubr.msk.f32.vlgmr.msra.gmra.mxu1 %vm1502_vm4, %v1545_v54  ;;  %2666 = vmatprep.subr.mxu0 %v3087_v0 }
 0x45a   : > { %2640 = vmatpush3.msra.mxu1 %v1181_v28  ;;  %2641 = vmatprep.mubr.msk.f32.mxu1 %vm3088_vm0, %v3087_v0 }
 0x45b   : > { %1624 = vrot.lane.b32.xlu0 %v1612_v29, %s3096_s17  ;;  %2667 = vmatpush3.msra.mxu0 %v2106_v2  ;;  %v2102_v29 = vld [vmem:[#allocation11] sm:$0xff] }
 0x45c   : > { %2668 = vmatprep.subr.mxu0 %v3087_v0 }
 0x45d   : > { %2642 = vmatmul.mubr.msk.f32.vlgmr.msra.gmra.mxu1 %vm1502_vm4, %v1546_v1  ;;  %2669 = vmatpush3.msra.mxu0 %v2105_v3 }
 0x45e   : > { %2670 = vmatprep.subr.mxu0 %v3087_v0 }
 0x45f   : > { %1628 = vrot.lane.b32.xlu0 %v1603_v31, %s3089_s11  ;;  %2671 = vmatpush3.msra.mxu0 %v2104_v14 }
 0x460   : > { %2672 = vmatprep.subr.mxu0 %v3087_v0 }
 0x461   : > { %2673 = vmatpush3.msra.mxu0 %v2103_v8 }
 0x462   : > { %2674 = vmatprep.subr.mxu0 %v3087_v0 }
 0x463   : > { %1632 = vrot.lane.b32.xlu0 %v1613_v32, %s3097_s5  ;;  %2675 = vmatpush3.msra.mxu0 %v2102_v29 }
 0x511   : > { %v1726_v44 = vpop.f32.mrf.mxu1 }
 0x513   : > { %v2628_v45 = vpop.f32.mrf.mxu1 }
 0x515   : > { %v1799_v46 = vpop.f32.mrf.mxu1 }
 0x517   : > { %v2633_v47 = vpop.f32.mrf.mxu1 }
 0x519   : > { %v1872_v48 = vpop.f32.mrf.mxu1 }
 0x51a   : > { %v1949_v50 = vcombine.low %v1726_v44, %v1872_v48  ;;  %v1950_v51 = vcombine.high %v1726_v44, %v1872_v48 }
 0x51b   : > { %v2638_v49 = vpop.f32.mrf.mxu1 }
 0x51c   : > { %v1957_v57 = vrot.slane %v1949_v50, %v3442_v19  ;;  %v1964_v58 = vrot.slane %v1950_v51, %v3442_v19 }
 0x51d   : > { %v1945_v53 = vpop.f32.mrf.mxu1 }
 0x51e   : > { %v1965_v54 = vcombine.low %v1799_v46, %v1945_v53  ;;  %v1966_v55 = vcombine.high %v1799_v46, %v1945_v53  ;;  %v1610_v46 = vrot.slane %v1596_v22, %v3446_v26 }
 0x51f   : > { %v2643_v56 = vpop.f32.mrf.mxu1 }
 0x520   : > { %v1973_v59 = vrot.slane %v1965_v54, %v3442_v19  ;;  %v1980_v60 = vrot.slane %v1966_v55, %v3442_v19  ;;  %v1614_v50 = vcombine.high %v1610_v46, %v3087_v0 }
 0x522   : > { %v1981_v61 = vcombine.low %v1957_v57, %v1973_v59  ;;  %v1982_v62 = vcombine.high %v1957_v57, %v1973_v59  ;;  %v1997_v63 = vcombine.low %v1964_v58, %v1980_v60  ;;  %v1998_v1 = vcombine.high %v1964_v58, %v1980_v60 }
 0x524   : > { %v1989_v4 = vrot.slane %v1981_v61, %v3446_v26  ;;  %v1996_v5 = vrot.slane %v1982_v62, %v3446_v26  ;;  %v2005_v6 = vrot.slane %v1997_v63, %v3446_v26  ;;  %v2012_v7 = vrot.slane %v1998_v1, %v3446_v26 }
 0x526   : > { %v2017_v9 = vcombine.low %v1989_v4, %v1996_v5  ;;  %v2459_v11 = vcombine.high %v1989_v4, %v1996_v5  ;;  %v2033_v12 = vcombine.low %v2005_v6, %v2012_v7  ;;  %v2460_v13 = vcombine.high %v2005_v6, %v2012_v7 }
 0x528   : > { %v2024_v16 = vrot.slane %v2017_v9, %v3442_v19  ;;  %v2032_v10 = vrot.slane %v2459_v11, %v3442_v19  ;;  %v2040_v17 = vrot.slane %v2033_v12, %v3442_v19  ;;  %v2048_v20 = vrot.slane %v2460_v13, %v3442_v19 }
 0x52a   : > { %v2049_v21 = vcombine.low %v2024_v16, %v2032_v10  ;;  %v2065_v24 = vcombine.low %v2040_v17, %v2048_v20  ;;  %v2050_v25 = vcombine.high %v2024_v16, %v2032_v10  ;;  %v2066_v28 = vcombine.high %v2040_v17, %v2048_v20 }
 0x52c   : > { %v2057_v30 = vrot.slane %v2049_v21, %v3446_v26  ;;  %v2073_v31 = vrot.slane %v2065_v24, %v3446_v26  ;;  %v2064_v33 = vrot.slane %v2050_v25, %v3446_v26  ;;  %v2080_v19 = vrot.slane %v2066_v28, %v3446_v26 }
 0x52e   : > { %v2082_v32 = vcombine.high %v2057_v30, %v2073_v31  ;;  %v2081_v34 = vcombine.low %v2057_v30, %v2073_v31  ;;  %v2083_v35 = vcombine.low %v2064_v33, %v2080_v19  ;;  %v2084_v36 = vcombine.high %v2064_v33, %v2080_v19 }
 0x530   : > { %2086 = vrot.lane.b32.xlu1 %v2082_v32, %s3089_s11  ;;  %s3646_s11 = scalar_lea.hbm %s3716_s8, %s2464_s27 }
 0x534   : > { %2090 = vrot.lane.b32.xlu1 %v2083_v35, %s3091_s24  ;;  %s2969_s24 = scalar_lea.vmem %s3648_s13, 64 }
 0x535   : > { %p2970_p7 = scmp.ne.s32.totalorder %s3648_s13, %s2969_s24  ;;  %p2977_p8 = scmp.lt.s32.totalorder %s2975_s19, %s2969_s24 }
 0x537   : > { %p2971_p3 = pnand %p2970_p7, %p3766_p0  ;;  %p2978_p11 = por %p2977_p8, %p2976_p4 }
 0x538   : > { %2094 = vrot.lane.b32.xlu1 %v2084_v36, %s3090_s22  ;;  %s2207_s22 = scalar_lea.sflag [#allocation15], %s3349_s25 }
 0x539   : > { %p2972_p6 = pneg %p2971_p3 }
 0x53b   : > { %p2979_p5 = pnand %p2978_p11, %p2972_p6 }
 0x5a2   : > { %v2087_v37 = vpop.permute.xlu1 %2086 }
 0x5a3   : > { %v2097_v39 = vsel %vm1182_vm1, %v2081_v34, %v2087_v37 }
 0x5a6   : > { %v2091_v38 = vpop.permute.xlu1 %2090 }
 0x5a7   : > { %v2099_v40 = vsel %vm2098_vm5, %v2097_v39, %v2091_v38 }
 0x5aa   : > { %v2095_v41 = vpop.permute.xlu1 %2094 }
 0x5ab   : > { %v2101_v42 = vsel %vm2100_vm6, %v2099_v40, %v2095_v41 }
 0x5ac   : > { %2677 = vmatmul.mubr.f32.vlgmr.msra.gmra.mxu0 %v2101_v42 }
 0x66c   : > { %v2184_v43 = vpop.f32.mrf.mxu0 }
 0x66d   : > { %v2185_v44 = vadd.f32 %v2184_v43, %v3410_v52 }
 0x66e   : > { %v2678_v45 = vpop.f32.mrf.mxu0 }
 0x66f   : > { %2188 = vadd.xlane.f32.xlu1 %v2185_v44 }
 0x680   : > { %1620 = vrot.lane.b32.xlu1 %v3576_v27, %s3098_s20  ;;  %v1617_v27 = vpop.permute.xlu0 %1616 }
 0x681   : > { %v1643_v18 = vsel %vm1502_vm4, %v3570_v23, %v1617_v27 }
 0x684   : > { %1636 = vrot.lane.b32.xlu1 %v1610_v46, %s3099_s7  ;;  %v1625_v51 = vpop.permute.xlu0 %1624 }
 0x688   : > { %v1629_v15 = vpop.permute.xlu0 %1628 }
 0x68c   : > { %v1633_v54 = vpop.permute.xlu0 %1632 }
 0x6f8   : > { %v2189_v47 = vpop.xlane.xlu1 %2188 }
 0x6f9   : > { %v2191_v48 = vmul.f32 0.0078125, %v2189_v47 }
 0x6fb   : > { %v3633_v49 = vsub.f32 %v2185_v44, %v2191_v48 }
 0x6fc   : > { %v1621_v26 = vpop.permute.xlu1 %1620 }
 0x6fd   : > { %v2193_v52 = vmul.f32 %v3633_v49, %v3633_v49  ;;  %v1645_v22 = vsel %vm1644_vm7, %v1643_v18, %v1621_v26 }
 0x6fe   : > { %v1647_v53 = vsel %vm1646_vm8, %v1645_v22, %v1625_v51 }
 0x6ff   : > { %2194 = vadd.xlane.f32.xlu0 %v2193_v52  ;;  %v1648_v55 = vsel %vm1182_vm1, %v1647_v53, %v1629_v15 }
 0x700   : > { %v1650_v56 = vsel %vm1649_vm9, %v1648_v55, %v1633_v54  ;;  %v1637_v57 = vpop.permute.xlu1 %1636 }
 0x701   : > { %v1652_v59 = vsel %vm1651_vm10, %v1650_v56, %v1637_v57 }
 0x715   : > { %1640 = vrot.lane.b32.xlu0 %v1614_v50, %s3100_s12 }
 0x788   : > { %v2195_v0 = vpop.xlane.xlu0 %2194 }
 0x789   : > { %v2196_v58 = vmul.f32 0.0078125, %v2195_v0 }
 0x78b   : > { %v2197_v23 = vadd.f32 1e-05, %v2196_v58 }
 0x78c   : > { %v1641_v60 = vpop.permute.xlu0 %1640 }
 0x78d   : > { %2805 = vrsqrt.f32 %v2197_v23  ;;  %v1654_v61 = vsel %vm1653_vm11, %v1652_v59, %v1641_v60 }
 0x78e   : > { %1656 = vst.msk [vmem:[%s459_s1] sm:$0xf] %vm1655_vm12, %v1654_v61 }
 0x78f   : > { %2982 = shalt.err (!%p2979_p5)
}
 0x790   : > { %s2983_s21 = scalar_lea.hbm %s3646_s11, 64  ;;  %s2987_s17 = scalar_lea.hbm %s3716_s8, 128 }
 0x791   : > { %p2984_p10 = scmp.ne.s32.totalorder %s3646_s11, %s2983_s21  ;;  %p2988_p13 = scmp.lt.s32.totalorder %s3646_s11, %s3716_s8 }
 0x792   : > { %p2989_p1 = scmp.lt.s32.totalorder %s2987_s17, %s2983_s21 }
 0x793   : > { %p2985_p9 = pnand %p2984_p10, %p3766_p0 }
 0x794   : > { %p2990_p12 = por %p2989_p1, %p2988_p13 }
 0x795   : > { %p2986_p2 = pneg %p2985_p9 }
 0x797   : > { %p2991_p7 = pnand %p2990_p12, %p2986_p2 }
 0x799   : > { %2994 = shalt.err (!%p2991_p7)
}
 0x79a   : > { %2698 = dma.vmem_to_hbm [thread:$0]  (%p3766_p0), %s3648_s13, 64, %s3646_s11, %s2207_s22   ;;  %v2806_v62 = vpop.eup %2805 }
 0x79b   : > { %s2463_s7 = sshll.u32 %s3169_s9, 7  ;;  %s452_s12 = scalar_lea.vmem [#allocation13], %s3352_s14  ;;  %v2199_v63 = vmul.f32 %v2806_v62, %v3633_v49 }
 0x79c   : > { %s2220_s23 = sshll.u32 %s452_s12, 4  ;;  %s3767_s10 = sld [smem:[#allocation30_spill]]  ;;  %s2221_s23 = int_to_ptr.vmem [resolvable:$true] %s2220_s23 }
 0x79d   : > { %2200 = vst [vmem:[%s452_s12] sm:$0xff] %v2199_v63  ;;  %s2202_s24 = scalar_lea.sflag [#allocation4], %s3349_s25  ;;  %s2995_s16 = scalar_lea.vmem %s2221_s23, 128 }
 0x79e   : > { %p2996_p3 = scmp.ne.s32.totalorder %s2221_s23, %s2995_s16  ;;  %s3102_s4 = smov [#allocation13]  }
 0x79f   : > { %s2999_s13 = sshll.u32 %s3102_s4, 4  ;;  %s3000_s13 = int_to_ptr.vmem [resolvable:$false] %s2999_s13 }
 0x7a0   : > { %p2997_p6 = pnand %p2996_p3, %p3766_p0  ;;  %s3001_s9 = scalar_lea.vmem %s3000_s13, 256 }
 0x7a1   : > { %p3002_p8 = scmp.lt.s32.totalorder %s2221_s23, %s3000_s13  ;;  %p3003_p11 = scmp.lt.s32.totalorder %s3001_s9, %s2995_s16 }
 0x7a2   : > { %s2218_s15 = scalar_lea.hbm %s3767_s10, %s2463_s7  ;;  %p2998_p4 = pneg %p2997_p6 }
 0x7a3   : > { %p3004_p5 = por %p3003_p11, %p3002_p8 }
 0x7a5   : > { %p3005_p10 = pnand %p3004_p5, %p2998_p4 }
 0x7a7   : > { %3008 = shalt.err (!%p3005_p10)
}
 0x7a8   : > { %s3009_s14 = scalar_lea.hbm %s2218_s15, 128  ;;  %s3013_s22 = scalar_lea.hbm %s3767_s10, 256 }
 0x7a9   : > { %p3010_p9 = scmp.ne.s32.totalorder %s2218_s15, %s3009_s14  ;;  %p3014_p1 = scmp.lt.s32.totalorder %s2218_s15, %s3767_s10 }
 0x7aa   : > { %p3015_p12 = scmp.lt.s32.totalorder %s3013_s22, %s3009_s14 }
 0x7ab   : > { %p3011_p2 = pnand %p3010_p9, %p3766_p0 }
 0x7ac   : > { %p3016_p7 = por %p3015_p12, %p3014_p1 }
 0x7ad   : > { %p3012_p13 = pneg %p3011_p2 }
 0x7af   : > { %p3017_p3 = pnand %p3016_p7, %p3012_p13 }
 0x7b1   : > { %3020 = shalt.err (!%p3017_p3)
}
 0x7b2   : > { %2697 = dma.vmem_to_hbm [thread:$0]  (%p3766_p0), %s2221_s23, 128, %s2218_s15, %s2202_s24  }
 0x7b3 PF: > { %s3768_s18 = sld [smem:[#allocation22_spill]] }
 0x7b4   : > { %s3769_s30 = sld [smem:[#allocation24_spill]] }
 0x7b5   : > { %s3770_s17 = sld [smem:[#allocation23_spill]] }
 0x7b9   : > { %s2245_s5 = sand.u32 1, %s3768_s18  }
 0x7ba   : > { %p3771_p6 = scmp.ne.s32.totalorder %s3769_s30, 0  ;;  %s2246_s20 = scalar_lea.sflag [#allocation4], %s2245_s5 }
 0x7bb   : > { %p3772_p4 = scmp.ge.s32.totalorder %s3770_s17, 2 }
 0x7bd   : > { %p2722_p8 = pnand %p3772_p4, %p3771_p6 }
 0x7bf   : > { %p2723_p11 = pneg %p2722_p8 }
 0x7c1   : > { %3054 = dma.done.wait (%p2723_p11), %s2246_s20, 128  }
 0x7c2   : > { %3056 = vsyncadd (%p2723_p11), %s2246_s20, 4294967168  ;;  %s2255_s7 = scalar_lea.sflag [#allocation15], %s2245_s5 }
 0x7c3   : > { %3058 = dma.done.wait (%p2723_p11), %s2255_s7, 64  }
 0x7c4   : > { %3060 = vsyncadd (%p2723_p11), %s2255_s7, 4294967232  ;;  %s3773_s30 = sld [smem:[#allocation25_spill]]  ;;  %s3775_s27 = smov %s3067_s28 }
 0x7c5   : > { %s3774_s26 = sld [smem:[#allocation26_spill]]  ;;  %s3776_s28 = smov %s3071_s29 }
 0x7ca   : > { %p30_p0 = scmp.ge.s32.totalorder %s3773_s30, 4  }
 0x7cb   : > { %s3777_s29 = smov %s3774_s26 }
 0x7cc   :  { %32 = sbr.rel (!%p30_p0) target bundleno = 16 (0x10), region = 149 }
 0x7d1   :  { %2260 = vsyncpa [#allocation3], 1 }
 0x7d2   :  { %2262 = vsyncpa [#allocation3 + $0x1], 1 }
 0x7d3   :  { %2263 = vsyncpa [#allocation6], 1 }
 0x7d4   :  { %2265 = vsyncpa [#allocation6 + $0x1], 1 }
 0x7d5   :  { %2266 = vsyncpa [#allocation9], 1 }
 0x7d6   :  { %2267 = vsyncpa [#allocation12], 1 }
 0x7d7   :  { %2268 = vsyncpa [#allocation4], 1 }
 0x7d8   :  { %2270 = vsyncpa [#allocation4 + $0x1], 1 }
 0x7d9   :  { %2271 = vsyncpa [#allocation15], 1 }
 0x7da   :  { %2273 = vsyncpa [#allocation15 + $0x1], 1 }

</bundles_post_ra>
